<compile_context>
chip_gen: v6e
topology: v6e:2x2x1
jax: 0.10.0
libtpu: 0.0.40
codegen_flags: <defaults>
</compile_context>

<pallas_src>
import functools

import jax
import jax.numpy as jnp
from jax.experimental import pallas as pl
from jax.experimental.pallas import tpu as pltpu


def _cross_attention_kernel(enc_ref, dec_ref, wq_ref, wk_ref, wv_ref,
                            wp3_ref, bp_ref, out_ref, kh_sc, vh_sc,
                            *, num_heads, scale):
    # Per grid step: one batch element, one query tile.
    #   enc_ref: (1, N_enc, C)   dec_ref / out_ref: (1, block_q, C)
    #   kh_sc / vh_sc: (H, N_enc, hd) bf16 scratch, persistent across qt.
    C = dec_ref.shape[2]
    hd = C // num_heads

    def split_heads(x):
        # (n, C) -> (H, n, hd) via static lane slices + a major-axis stack
        # (no in-kernel major/sublane transpose; done once per tensor).
        return jnp.stack(
            [x[:, h * hd:(h + 1) * hd] for h in range(num_heads)], axis=0)

    # --- K/V projection + head split: hoisted out of the query-tile axis. ---
    @pl.when(pl.program_id(1) == 0)
    def _():
        enc2d = enc_ref[0]                                       # (N_enc, C)
        k = jnp.dot(enc2d, wk_ref[...], preferred_element_type=jnp.float32)
        v = jnp.dot(enc2d, wv_ref[...], preferred_element_type=jnp.float32)
        kh_sc[...] = split_heads(k).astype(jnp.bfloat16)
        vh_sc[...] = split_heads(v).astype(jnp.bfloat16)

    # --- Q projection (softmax scale folded in once), head split. ---
    q = jnp.dot(dec_ref[0], wq_ref[...],
                preferred_element_type=jnp.float32) * scale      # (block_q, C)
    qh = split_heads(q).astype(jnp.bfloat16)                     # (H, bq, hd)
    kh = kh_sc[...]                                              # (H, N_enc, hd)
    vh = vh_sc[...]                                              # (H, N_enc, hd)

    # --- Head-batched attention: bf16 MXU inputs, f32 accumulation. ---
    s = jnp.einsum('hqd,hkd->hqk', qh, kh,
                   preferred_element_type=jnp.float32)           # (H, bq, N_enc)
    s = s - jnp.max(s, axis=-1, keepdims=True)
    p = jnp.exp(s)
    p = p * pl.reciprocal(jnp.sum(p, axis=-1, keepdims=True), approx=True)
    x = jnp.einsum('hqk,hkd->hqd', p.astype(jnp.bfloat16), vh,
                   preferred_element_type=jnp.float32)           # (H, bq, hd)

    # --- Output projection folded per head, reduce over heads, one store. ---
    t = jnp.einsum('hqd,hdc->hqc', x, wp3_ref[...],
                   preferred_element_type=jnp.float32)           # (H, bq, C)
    out = jnp.sum(t, axis=0) + bp_ref[...]                       # (bq, C)
    out_ref[0] = out.astype(out_ref.dtype)


def cross_attention(enc, dec, wq, wk, wv, wp, bp, *, num_heads, block_q=None):
    """enc: (B, N_enc, C), dec: (B, N_dec, C).
    wq/wk/wv/wp: (C_in, C_out) pre-transposed.  bp: (1, C)."""
    B, N_dec, C = dec.shape
    N_enc = enc.shape[1]
    assert C % num_heads == 0, "dim must be divisible by num_heads"
    hd = C // num_heads
    scale = float(hd ** -0.5)

    block_q = N_dec if block_q is None else block_q
    assert N_dec % block_q == 0
    if block_q != N_dec:
        assert block_q % 8 == 0, "partial query tiles must be sublane-aligned"
    grid = (B, N_dec // block_q)   # batch axis -> >=2 parallel steps (v7x TCs)

    # Per-head slabs of the output-projection weight (free, wrapper-side).
    wp3 = wp.reshape(num_heads, hd, C)

    # VMEM budget: blocks (double-buffered) + weights + scratch + intermediates.
    itemsize = dec.dtype.itemsize
    w_item = wq.dtype.itemsize
    est = (2 * (N_enc * C + 2 * block_q * C) * itemsize
           + 2 * (3 * C * C + num_heads * hd * C + C) * w_item
           + 2 * 2 * num_heads * N_enc * hd
           + (block_q * C + 2 * N_enc * C) * 4
           + 2 * num_heads * block_q * N_enc * 4
           + num_heads * block_q * (hd + C) * 4)
    vmem_limit = int(min(max(2 * est, 8 * 1024 * 1024), 64 * 1024 * 1024))

    kernel = functools.partial(_cross_attention_kernel,
                               num_heads=num_heads, scale=scale)

    return pl.pallas_call(
        kernel,
        out_shape=jax.ShapeDtypeStruct((B, N_dec, C), dec.dtype),
        grid_spec=pltpu.PrefetchScalarGridSpec(
            num_scalar_prefetch=0,
            grid=grid,
            in_specs=[
                pl.BlockSpec((1, N_enc, C), lambda b, qt: (b, 0, 0)),       # enc (const in qt)
                pl.BlockSpec((1, block_q, C), lambda b, qt: (b, qt, 0)),    # dec
                pl.BlockSpec((C, C), lambda b, qt: (0, 0)),                 # wq^T
                pl.BlockSpec((C, C), lambda b, qt: (0, 0)),                 # wk^T
                pl.BlockSpec((C, C), lambda b, qt: (0, 0)),                 # wv^T
                pl.BlockSpec((num_heads, hd, C), lambda b, qt: (0, 0, 0)),  # wp^T per head
                pl.BlockSpec((1, C), lambda b, qt: (0, 0)),                 # proj bias
            ],
            out_specs=pl.BlockSpec((1, block_q, C),
                                   lambda b, qt: (b, qt, 0)),
            scratch_shapes=[
                pltpu.VMEM((num_heads, N_enc, hd), jnp.bfloat16),   # K heads
                pltpu.VMEM((num_heads, N_enc, hd), jnp.bfloat16),   # V heads
            ],
        ),
        compiler_params=pltpu.CompilerParams(
            dimension_semantics=("parallel", "arbitrary"),
            vmem_limit_bytes=vmem_limit),
    )(enc, dec, wq, wk, wv, wp3, bp)


def _reference(enc, dec, wq, wk, wv, wp, bp, *, num_heads):
    """Pure-JAX mirror of the PyTorch forward (weights already transposed)."""
    B, N_dec, C = dec.shape
    N_enc = enc.shape[1]
    hd = C // num_heads
    scale = hd ** (-0.5)
    q = (dec @ wq).reshape(B, N_dec, num_heads, hd).transpose(0, 2, 1, 3)
    k = (enc @ wk).reshape(B, N_enc, num_heads, hd).transpose(0, 2, 1, 3)
    v = (enc @ wv).reshape(B, N_enc, num_heads, hd).transpose(0, 2, 1, 3)
    attn = jnp.einsum("bhqd,bhkd->bhqk", q, k) * scale
    attn = jax.nn.softmax(attn, axis=-1)
    x = jnp.einsum("bhqk,bhkd->bhqd", attn, v)
    x = x.transpose(0, 2, 1, 3).reshape(B, N_dec, C)
    return x @ wp + bp


if __name__ == "__main__":
    # Small shapes: B=2, C=32 (dim), num_heads=8 -> head_dim=4, N_enc=16, N_dec=8.
    B, C, H = 2, 32, 8
    N_enc, N_dec = 16, 8

    key = jax.random.PRNGKey(0)
    k_enc, k_dec, k_wq, k_wk, k_wv, k_wp, k_bp = jax.random.split(key, 7)

    enc = jax.random.normal(k_enc, (B, N_enc, C), dtype=jnp.float32)
    dec = jax.random.normal(k_dec, (B, N_dec, C), dtype=jnp.float32)

    # PyTorch Linear weight is (out, in); we store the transpose (in, out).
    std = 0.02
    wq = std * jax.random.normal(k_wq, (C, C), dtype=jnp.float32)
    wk = std * jax.random.normal(k_wk, (C, C), dtype=jnp.float32)
    wv = std * jax.random.normal(k_wv, (C, C), dtype=jnp.float32)
    wp = std * jax.random.normal(k_wp, (C, C), dtype=jnp.float32)
    bp = std * jax.random.normal(k_bp, (1, C), dtype=jnp.float32)

    out = cross_attention(enc, dec, wq, wk, wv, wp, bp, num_heads=H)
    out = jax.block_until_ready(out)

    ref = _reference(enc, dec, wq, wk, wv, wp, bp, num_heads=H)
    assert out.shape == (B, N_dec, C)
    # Tolerance covers bf16 MXU inputs on the attention matmuls and the
    # approximate (EUP) reciprocal in the softmax denominator.
    err = jnp.max(jnp.abs(out - ref))
    assert jnp.allclose(out, ref, atol=3e-3, rtol=3e-2), f"mismatch: max abs err {err}"

    print("KERNEL_OK")
</pallas_src>

<mosaic_0001>
module attributes {stable_mosaic.version = 11 : i64} {
  func.func @_cross_attention_kernel(%arg0: i32, %arg1: i32, %arg2: memref<1x16x32xf32, #tpu.memory_space<vmem>>, %arg3: memref<1x8x32xf32, #tpu.memory_space<vmem>>, %arg4: memref<32x32xf32, #tpu.memory_space<vmem>>, %arg5: memref<32x32xf32, #tpu.memory_space<vmem>>, %arg6: memref<32x32xf32, #tpu.memory_space<vmem>>, %arg7: memref<8x4x32xf32, #tpu.memory_space<vmem>>, %arg8: memref<1x32xf32, #tpu.memory_space<vmem>>, %arg9: memref<1x8x32xf32, #tpu.memory_space<vmem>>, %arg10: memref<8x16x4xbf16, #tpu.memory_space<vmem>>, %arg11: memref<8x16x4xbf16, #tpu.memory_space<vmem>>) attributes {dimension_semantics = [#tpu.dimension_semantics<parallel>, #tpu.dimension_semantics<arbitrary>], iteration_bounds = array<i64: 2, 1>, scalar_prefetch = 0 : i64, scratch_operands = 2 : i64, tpu.core_type = #tpu.core_type<tc>, window_params = [{transform_indices = @transform_0, window_bounds = array<i64: 1, 16, 32>}, {transform_indices = @transform_1, window_bounds = array<i64: 1, 8, 32>}, {pipeline_mode = #tpu.pipeline_mode<synchronous>, transform_indices = @transform_2, window_bounds = array<i64: 32, 32>}, {pipeline_mode = #tpu.pipeline_mode<synchronous>, transform_indices = @transform_3, window_bounds = array<i64: 32, 32>}, {pipeline_mode = #tpu.pipeline_mode<synchronous>, transform_indices = @transform_4, window_bounds = array<i64: 32, 32>}, {pipeline_mode = #tpu.pipeline_mode<synchronous>, transform_indices = @transform_5, window_bounds = array<i64: 8, 4, 32>}, {pipeline_mode = #tpu.pipeline_mode<synchronous>, transform_indices = @transform_6, window_bounds = array<i64: 1, 32>}, {transform_indices = @transform_7, window_bounds = array<i64: 1, 8, 32>}]} {
    %c0_i32 = arith.constant 0 : i32
    %0 = arith.cmpi eq, %arg1, %c0_i32 : i32
    %1 = arith.extui %0 : i1 to i32
    %c0_i32_0 = arith.constant 0 : i32
    %2 = arith.cmpi ne, %1, %c0_i32_0 : i32
    scf.if %2 {
      %c0_26 = arith.constant 0 : index
      %c0_27 = arith.constant 0 : index
      %c0_28 = arith.constant 0 : index
      %51 = vector.load %arg2[%c0_26, %c0_27, %c0_28] : memref<1x16x32xf32, #tpu.memory_space<vmem>>, vector<1x16x32xf32>
      %52 = vector.shape_cast %51 : vector<1x16x32xf32> to vector<16x32xf32>
      %c0_29 = arith.constant 0 : index
      %c0_30 = arith.constant 0 : index
      %53 = vector.load %arg5[%c0_29, %c0_30] : memref<32x32xf32, #tpu.memory_space<vmem>>, vector<32x32xf32>
      %cst_31 = arith.constant dense<0.000000e+00> : vector<16x32xf32>
      %54 = tpu.matmul %52, %53, %cst_31 {dimension_numbers = #tpu.dot_dimension_numbers<[1], [0], [0], [1], [0, 0, 1, 1], [], []>} : vector<16x32xf32>, vector<32x32xf32>, vector<16x32xf32> -> vector<16x32xf32>
      %c0_32 = arith.constant 0 : index
      %c0_33 = arith.constant 0 : index
      %55 = vector.load %arg6[%c0_32, %c0_33] : memref<32x32xf32, #tpu.memory_space<vmem>>, vector<32x32xf32>
      %cst_34 = arith.constant dense<0.000000e+00> : vector<16x32xf32>
      %56 = tpu.matmul %52, %55, %cst_34 {dimension_numbers = #tpu.dot_dimension_numbers<[1], [0], [0], [1], [0, 0, 1, 1], [], []>} : vector<16x32xf32>, vector<32x32xf32>, vector<16x32xf32> -> vector<16x32xf32>
      %57 = vector.extract_strided_slice %54 {offsets = [0, 0], sizes = [16, 4], strides = [1, 1]} : vector<16x32xf32> to vector<16x4xf32>
      %58 = vector.extract_strided_slice %54 {offsets = [0, 4], sizes = [16, 4], strides = [1, 1]} : vector<16x32xf32> to vector<16x4xf32>
      %59 = vector.extract_strided_slice %54 {offsets = [0, 8], sizes = [16, 4], strides = [1, 1]} : vector<16x32xf32> to vector<16x4xf32>
      %60 = vector.extract_strided_slice %54 {offsets = [0, 12], sizes = [16, 4], strides = [1, 1]} : vector<16x32xf32> to vector<16x4xf32>
      %61 = vector.extract_strided_slice %54 {offsets = [0, 16], sizes = [16, 4], strides = [1, 1]} : vector<16x32xf32> to vector<16x4xf32>
      %62 = vector.extract_strided_slice %54 {offsets = [0, 20], sizes = [16, 4], strides = [1, 1]} : vector<16x32xf32> to vector<16x4xf32>
      %63 = vector.extract_strided_slice %54 {offsets = [0, 24], sizes = [16, 4], strides = [1, 1]} : vector<16x32xf32> to vector<16x4xf32>
      %64 = vector.extract_strided_slice %54 {offsets = [0, 28], sizes = [16, 4], strides = [1, 1]} : vector<16x32xf32> to vector<16x4xf32>
      %65 = vector.shape_cast %57 : vector<16x4xf32> to vector<1x16x4xf32>
      %66 = vector.shape_cast %58 : vector<16x4xf32> to vector<1x16x4xf32>
      %67 = vector.shape_cast %59 : vector<16x4xf32> to vector<1x16x4xf32>
      %68 = vector.shape_cast %60 : vector<16x4xf32> to vector<1x16x4xf32>
      %69 = vector.shape_cast %61 : vector<16x4xf32> to vector<1x16x4xf32>
      %70 = vector.shape_cast %62 : vector<16x4xf32> to vector<1x16x4xf32>
      %71 = vector.shape_cast %63 : vector<16x4xf32> to vector<1x16x4xf32>
      %72 = vector.shape_cast %64 : vector<16x4xf32> to vector<1x16x4xf32>
      %73 = tpu.concatenate %65, %66, %67, %68, %69, %70, %71, %72 in 0 : vector<1x16x4xf32>, vector<1x16x4xf32>, vector<1x16x4xf32>, vector<1x16x4xf32>, vector<1x16x4xf32>, vector<1x16x4xf32>, vector<1x16x4xf32>, vector<1x16x4xf32> -> vector<8x16x4xf32>
      %74 = arith.truncf %73 : vector<8x16x4xf32> to vector<8x16x4xbf16>
      %c0_35 = arith.constant 0 : index
      %c0_36 = arith.constant 0 : index
      %c0_37 = arith.constant 0 : index
      %75 = vector.load %arg10[%c0_35, %c0_36, %c0_37] : memref<8x16x4xbf16, #tpu.memory_space<vmem>>, vector<8x16x4xbf16>
      tpu.vector_store %arg10[%c0_35, %c0_36, %c0_37], %74 {strides = array<i32>} : memref<8x16x4xbf16, #tpu.memory_space<vmem>>, vector<8x16x4xbf16>,
      %76 = vector.extract_strided_slice %56 {offsets = [0, 0], sizes = [16, 4], strides = [1, 1]} : vector<16x32xf32> to vector<16x4xf32>
      %77 = vector.extract_strided_slice %56 {offsets = [0, 4], sizes = [16, 4], strides = [1, 1]} : vector<16x32xf32> to vector<16x4xf32>
      %78 = vector.extract_strided_slice %56 {offsets = [0, 8], sizes = [16, 4], strides = [1, 1]} : vector<16x32xf32> to vector<16x4xf32>
      %79 = vector.extract_strided_slice %56 {offsets = [0, 12], sizes = [16, 4], strides = [1, 1]} : vector<16x32xf32> to vector<16x4xf32>
      %80 = vector.extract_strided_slice %56 {offsets = [0, 16], sizes = [16, 4], strides = [1, 1]} : vector<16x32xf32> to vector<16x4xf32>
      %81 = vector.extract_strided_slice %56 {offsets = [0, 20], sizes = [16, 4], strides = [1, 1]} : vector<16x32xf32> to vector<16x4xf32>
      %82 = vector.extract_strided_slice %56 {offsets = [0, 24], sizes = [16, 4], strides = [1, 1]} : vector<16x32xf32> to vector<16x4xf32>
      %83 = vector.extract_strided_slice %56 {offsets = [0, 28], sizes = [16, 4], strides = [1, 1]} : vector<16x32xf32> to vector<16x4xf32>
      %84 = vector.shape_cast %76 : vector<16x4xf32> to vector<1x16x4xf32>
      %85 = vector.shape_cast %77 : vector<16x4xf32> to vector<1x16x4xf32>
      %86 = vector.shape_cast %78 : vector<16x4xf32> to vector<1x16x4xf32>
      %87 = vector.shape_cast %79 : vector<16x4xf32> to vector<1x16x4xf32>
      %88 = vector.shape_cast %80 : vector<16x4xf32> to vector<1x16x4xf32>
      %89 = vector.shape_cast %81 : vector<16x4xf32> to vector<1x16x4xf32>
      %90 = vector.shape_cast %82 : vector<16x4xf32> to vector<1x16x4xf32>
      %91 = vector.shape_cast %83 : vector<16x4xf32> to vector<1x16x4xf32>
      %92 = tpu.concatenate %84, %85, %86, %87, %88, %89, %90, %91 in 0 : vector<1x16x4xf32>, vector<1x16x4xf32>, vector<1x16x4xf32>, vector<1x16x4xf32>, vector<1x16x4xf32>, vector<1x16x4xf32>, vector<1x16x4xf32>, vector<1x16x4xf32> -> vector<8x16x4xf32>
      %93 = arith.truncf %92 : vector<8x16x4xf32> to vector<8x16x4xbf16>
      %c0_38 = arith.constant 0 : index
      %c0_39 = arith.constant 0 : index
      %c0_40 = arith.constant 0 : index
      %94 = vector.load %arg11[%c0_38, %c0_39, %c0_40] : memref<8x16x4xbf16, #tpu.memory_space<vmem>>, vector<8x16x4xbf16>
      tpu.vector_store %arg11[%c0_38, %c0_39, %c0_40], %93 {strides = array<i32>} : memref<8x16x4xbf16, #tpu.memory_space<vmem>>, vector<8x16x4xbf16>,
    } else {
    }
    %c0 = arith.constant 0 : index
    %c0_1 = arith.constant 0 : index
    %c0_2 = arith.constant 0 : index
    %3 = vector.load %arg3[%c0, %c0_1, %c0_2] : memref<1x8x32xf32, #tpu.memory_space<vmem>>, vector<1x8x32xf32>
    %4 = vector.shape_cast %3 : vector<1x8x32xf32> to vector<8x32xf32>
    %c0_3 = arith.constant 0 : index
    %c0_4 = arith.constant 0 : index
    %5 = vector.load %arg4[%c0_3, %c0_4] : memref<32x32xf32, #tpu.memory_space<vmem>>, vector<32x32xf32>
    %cst = arith.constant dense<0.000000e+00> : vector<8x32xf32>
    %6 = tpu.matmul %4, %5, %cst {dimension_numbers = #tpu.dot_dimension_numbers<[1], [0], [0], [1], [0, 0, 1, 1], [], []>} : vector<8x32xf32>, vector<32x32xf32>, vector<8x32xf32> -> vector<8x32xf32>
    %cst_5 = arith.constant 5.000000e-01 : f32
    %7 = vector.broadcast %cst_5 : f32 to vector<8x32xf32>
    %8 = arith.mulf %6, %7 : vector<8x32xf32>
    %9 = vector.extract_strided_slice %8 {offsets = [0, 0], sizes = [8, 4], strides = [1, 1]} : vector<8x32xf32> to vector<8x4xf32>
    %10 = vector.extract_strided_slice %8 {offsets = [0, 4], sizes = [8, 4], strides = [1, 1]} : vector<8x32xf32> to vector<8x4xf32>
    %11 = vector.extract_strided_slice %8 {offsets = [0, 8], sizes = [8, 4], strides = [1, 1]} : vector<8x32xf32> to vector<8x4xf32>
    %12 = vector.extract_strided_slice %8 {offsets = [0, 12], sizes = [8, 4], strides = [1, 1]} : vector<8x32xf32> to vector<8x4xf32>
    %13 = vector.extract_strided_slice %8 {offsets = [0, 16], sizes = [8, 4], strides = [1, 1]} : vector<8x32xf32> to vector<8x4xf32>
    %14 = vector.extract_strided_slice %8 {offsets = [0, 20], sizes = [8, 4], strides = [1, 1]} : vector<8x32xf32> to vector<8x4xf32>
    %15 = vector.extract_strided_slice %8 {offsets = [0, 24], sizes = [8, 4], strides = [1, 1]} : vector<8x32xf32> to vector<8x4xf32>
    %16 = vector.extract_strided_slice %8 {offsets = [0, 28], sizes = [8, 4], strides = [1, 1]} : vector<8x32xf32> to vector<8x4xf32>
    %17 = vector.shape_cast %9 : vector<8x4xf32> to vector<1x8x4xf32>
    %18 = vector.shape_cast %10 : vector<8x4xf32> to vector<1x8x4xf32>
    %19 = vector.shape_cast %11 : vector<8x4xf32> to vector<1x8x4xf32>
    %20 = vector.shape_cast %12 : vector<8x4xf32> to vector<1x8x4xf32>
    %21 = vector.shape_cast %13 : vector<8x4xf32> to vector<1x8x4xf32>
    %22 = vector.shape_cast %14 : vector<8x4xf32> to vector<1x8x4xf32>
    %23 = vector.shape_cast %15 : vector<8x4xf32> to vector<1x8x4xf32>
    %24 = vector.shape_cast %16 : vector<8x4xf32> to vector<1x8x4xf32>
    %25 = tpu.concatenate %17, %18, %19, %20, %21, %22, %23, %24 in 0 : vector<1x8x4xf32>, vector<1x8x4xf32>, vector<1x8x4xf32>, vector<1x8x4xf32>, vector<1x8x4xf32>, vector<1x8x4xf32>, vector<1x8x4xf32>, vector<1x8x4xf32> -> vector<8x8x4xf32>
    %26 = arith.truncf %25 : vector<8x8x4xf32> to vector<8x8x4xbf16>
    %c0_6 = arith.constant 0 : index
    %c0_7 = arith.constant 0 : index
    %c0_8 = arith.constant 0 : index
    %27 = vector.load %arg10[%c0_6, %c0_7, %c0_8] : memref<8x16x4xbf16, #tpu.memory_space<vmem>>, vector<8x16x4xbf16>
    %c0_9 = arith.constant 0 : index
    %c0_10 = arith.constant 0 : index
    %c0_11 = arith.constant 0 : index
    %28 = vector.load %arg11[%c0_9, %c0_10, %c0_11] : memref<8x16x4xbf16, #tpu.memory_space<vmem>>, vector<8x16x4xbf16>
    "tpu.trace_start"() <{level = 10 : i32, message = "hqd,hkd->hqk"}> : () -> ()
    %cst_12 = arith.constant dense<0.000000e+00> : vector<8x8x16xf32>
    %29 = tpu.matmul %26, %27, %cst_12 {dimension_numbers = #tpu.dot_dimension_numbers<[2], [2], [1], [1], [0, 0, 0, 1, 1, 1], [0], [0]>} : vector<8x8x4xbf16>, vector<8x16x4xbf16>, vector<8x8x16xf32> -> vector<8x8x16xf32>
    "tpu.trace_stop"() : () -> ()
    %cst_13 = arith.constant dense<0xFF800000> : vector<8x8xf32>
    %30 = vector.multi_reduction <maximumf>, %29, %cst_13 [2] : vector<8x8x16xf32> to vector<8x8xf32>
    %31 = vector.shape_cast %30 : vector<8x8xf32> to vector<8x8x1xf32>
    %32 = vector.broadcast %31 : vector<8x8x1xf32> to vector<8x8x16xf32>
    %33 = arith.subf %29, %32 : vector<8x8x16xf32>
    %34 = math.exp %33 : vector<8x8x16xf32>
    %cst_14 = arith.constant dense<0.000000e+00> : vector<8x8xf32>
    %35 = vector.multi_reduction <add>, %34, %cst_14 [2] : vector<8x8x16xf32> to vector<8x8xf32>
    %36 = vector.shape_cast %35 : vector<8x8xf32> to vector<8x8x1xf32>
    %37 = tpu.reciprocal %36 {approx = true} : vector<8x8x1xf32> -> vector<8x8x1xf32>
    %38 = vector.broadcast %37 : vector<8x8x1xf32> to vector<8x8x16xf32>
    %39 = arith.mulf %34, %38 : vector<8x8x16xf32>
    %40 = arith.truncf %39 : vector<8x8x16xf32> to vector<8x8x16xbf16>
    "tpu.trace_start"() <{level = 10 : i32, message = "hqk,hkd->hqd"}> : () -> ()
    %cst_15 = arith.constant dense<0.000000e+00> : vector<8x8x4xf32>
    %41 = tpu.matmul %40, %28, %cst_15 {dimension_numbers = #tpu.dot_dimension_numbers<[2], [1], [1], [2], [0, 0, 0, 1, 1, 2], [0], [0]>} : vector<8x8x16xbf16>, vector<8x16x4xbf16>, vector<8x8x4xf32> -> vector<8x8x4xf32>
    "tpu.trace_stop"() : () -> ()
    %c0_16 = arith.constant 0 : index
    %c0_17 = arith.constant 0 : index
    %c0_18 = arith.constant 0 : index
    %42 = vector.load %arg7[%c0_16, %c0_17, %c0_18] : memref<8x4x32xf32, #tpu.memory_space<vmem>>, vector<8x4x32xf32>
    "tpu.trace_start"() <{level = 10 : i32, message = "hqd,hdc->hqc"}> : () -> ()
    %cst_19 = arith.constant dense<0.000000e+00> : vector<8x8x32xf32>
    %43 = tpu.matmul %41, %42, %cst_19 {dimension_numbers = #tpu.dot_dimension_numbers<[2], [1], [1], [2], [0, 0, 0, 1, 1, 2], [0], [0]>} : vector<8x8x4xf32>, vector<8x4x32xf32>, vector<8x8x32xf32> -> vector<8x8x32xf32>
    "tpu.trace_stop"() : () -> ()
    %cst_20 = arith.constant dense<0.000000e+00> : vector<8x32xf32>
    %44 = vector.multi_reduction <add>, %43, %cst_20 [0] : vector<8x8x32xf32> to vector<8x32xf32>
    %c0_21 = arith.constant 0 : index
    %c0_22 = arith.constant 0 : index
    %45 = vector.load %arg8[%c0_21, %c0_22] : memref<1x32xf32, #tpu.memory_space<vmem>>, vector<1x32xf32>
    %46 = vector.broadcast %45 : vector<1x32xf32> to vector<8x32xf32>
    %47 = arith.addf %44, %46 : vector<8x32xf32>
    %c0_23 = arith.constant 0 : index
    %c0_24 = arith.constant 0 : index
    %c0_25 = arith.constant 0 : index
    %48 = vector.load %arg9[%c0_23, %c0_24, %c0_25] : memref<1x8x32xf32, #tpu.memory_space<vmem>>, vector<1x8x32xf32>
    %49 = vector.shape_cast %48 : vector<1x8x32xf32> to vector<8x32xf32>
    %50 = vector.shape_cast %47 : vector<8x32xf32> to vector<1x8x32xf32>
    tpu.vector_store %arg9[%c0_23, %c0_24, %c0_25], %50 {strides = array<i32>} : memref<1x8x32xf32, #tpu.memory_space<vmem>>, vector<1x8x32xf32>,
    return
  }
  func.func @transform_0(%arg0: i32, %arg1: i32) -> (i32, i32, i32) {
    %c0_i32 = arith.constant 0 : i32
    %c0_i32_0 = arith.constant 0 : i32
    %c0_i32_1 = arith.constant 0 : i32
    return %arg0, %c0_i32, %c0_i32_0 : i32, i32, i32
  }
  func.func @transform_1(%arg0: i32, %arg1: i32) -> (i32, i32, i32) {
    %c0_i32 = arith.constant 0 : i32
    %c0_i32_0 = arith.constant 0 : i32
    return %arg0, %arg1, %c0_i32 : i32, i32, i32
  }
  func.func @transform_2(%arg0: i32, %arg1: i32) -> (i32, i32) {
    %c0_i32 = arith.constant 0 : i32
    %c0_i32_0 = arith.constant 0 : i32
    %c0_i32_1 = arith.constant 0 : i32
    return %c0_i32, %c0_i32_0 : i32, i32
  }
  func.func @transform_3(%arg0: i32, %arg1: i32) -> (i32, i32) {
    %c0_i32 = arith.constant 0 : i32
    %c0_i32_0 = arith.constant 0 : i32
    %c0_i32_1 = arith.constant 0 : i32
    return %c0_i32, %c0_i32_0 : i32, i32
  }
  func.func @transform_4(%arg0: i32, %arg1: i32) -> (i32, i32) {
    %c0_i32 = arith.constant 0 : i32
    %c0_i32_0 = arith.constant 0 : i32
    %c0_i32_1 = arith.constant 0 : i32
    return %c0_i32, %c0_i32_0 : i32, i32
  }
  func.func @transform_5(%arg0: i32, %arg1: i32) -> (i32, i32, i32) {
    %c0_i32 = arith.constant 0 : i32
    %c0_i32_0 = arith.constant 0 : i32
    %c0_i32_1 = arith.constant 0 : i32
    %c0_i32_2 = arith.constant 0 : i32
    return %c0_i32, %c0_i32_0, %c0_i32_1 : i32, i32, i32
  }
  func.func @transform_6(%arg0: i32, %arg1: i32) -> (i32, i32) {
    %c0_i32 = arith.constant 0 : i32
    %c0_i32_0 = arith.constant 0 : i32
    %c0_i32_1 = arith.constant 0 : i32
    return %c0_i32, %c0_i32_0 : i32, i32
  }
  func.func @transform_7(%arg0: i32, %arg1: i32) -> (i32, i32, i32) {
    %c0_i32 = arith.constant 0 : i32
    %c0_i32_0 = arith.constant 0 : i32
    return %arg0, %arg1, %c0_i32 : i32, i32, i32
  }
}

</mosaic_0001>

<bundles_post_ra>
// kernel: tpu_custom_call.1
= control target key start
LH: loop header
LB: loop body
LE: loop exit
PB: predicated region body
PF: predicated region fallthrough
CT: control target
= control target key end

     0   :  { %s4094_s0 = inlined_call_operand.hbm [shape: f32[2,16,32], index: 0, kind: input, shape index: {}]   ;;  %s4095_s1 = inlined_call_operand.hbm [shape: f32[2,8,32], index: 1, kind: input, shape index: {}]   ;;  %s4096_s2 = inlined_call_operand.hbm [shape: f32[32,32], index: 2, kind: input, shape index: {}]   ;;  %s4097_s3 = inlined_call_operand.hbm [shape: f32[32,32], index: 3, kind: input, shape index: {}]   ;;  %s4098_s4 = inlined_call_operand.hbm [shape: f32[32,32], index: 4, kind: input, shape index: {}]   ;;  %s4099_s5 = inlined_call_operand.hbm [shape: f32[8,4,32], index: 5, kind: input, shape index: {}]   ;;  %s4100_s6 = inlined_call_operand.vmem [shape: f32[1,32], index: 6, kind: input, shape index: {}]   ;;  %s4101_s7 = inlined_call_operand.hbm [shape: f32[2,8,32], index: 7, kind: output, shape index: {}]  }
   0x1   :  { %4109 = sst [smem:[#allocation26_spill]] %s4094_s0 }
   0x2   :  { %4110 = sst [smem:[#allocation27_spill]] %s4096_s2 }
   0x3   :  { %4111 = sst [smem:[#allocation28_spill]] %s4097_s3 }
   0x4   :  { %4112 = sst [smem:[#allocation29_spill]] %s4098_s4 }
   0x5   :  { %4113 = sst [smem:[#allocation30_spill]] %s4099_s5 }
   0x6   :  { %12 = vsyncpa [#allocation5], 0 }
   0x7   :  { %14 = vsyncpa [#allocation5 + $0x1], 0 }
   0x8   :  { %15 = vsyncpa [#allocation8], 0 }
   0x9   :  { %17 = vsyncpa [#allocation8 + $0x1], 0 }
   0xa   :  { %18 = vsyncpa [#allocation11], 0 }
   0xb   :  { %19 = vsyncpa [#allocation14], 0 }
   0xc   :  { %20 = vsyncpa [#allocation6], 0 }
   0xd   :  { %22 = vsyncpa [#allocation6 + $0x1], 0  ;;  %s3602_s24 = smov 0   ;;  %s3604_s25 = smov 0  }
   0xe   :  { %s3606_s26 = smov 0   ;;  %s3608_s27 = smov 0  }
   0xf   :  { %s3610_s28 = smov 0   ;;  %s3612_s29 = smov 0  }
  0x10 LB: > { %4114 = sst [smem:[#allocation22_spill]] %s3528_s26  ;;  %s3633_s30 = sadd.s32 4294967295, %s3540_s29   ;;  %s3540_s29 = sphi %s3612_s29, %s28_s29   ;;  %s3536_s28 = sphi %s3610_s28, %s4145_s28   ;;  %s3532_s27 = sphi %s3608_s27, %s4144_s27   ;;  %s3528_s26 = sphi %s3606_s26, %s4140_s26   ;;  %s3524_s25 = sphi %s3604_s25, %s4143_s25   ;;  %s3520_s24 = sphi %s3602_s24, %s4142_s24  }
  0x11   : > { %4115 = sst [smem:[#allocation23_spill]] %s3540_s29  ;;  %s2668_s8 = sadd.s32 4294967294, %s3540_s29  }
  0x12   : > { %p60_p0 = scmp.ne.s32.totalorder %s3524_s25, %s3520_s24  ;;  %p4102_p1 = scmp.eq.s32.totalorder %s3633_s30, 0 }
  0x13   : > { %p219_p2 = scmp.eq.s32.totalorder %s3633_s30, 1  ;;  %p225_p3 = scmp.eq.s32.totalorder %s2668_s8, 1 }
  0x14   : > { %p3642_p4 = por %p4102_p1, %p60_p0  ;;  %p2669_p5 = scmp.ge.s32.totalorder %s3540_s29, 1 }
  0x15   : > { %p3647_p6 = por %p225_p3, %p60_p0  ;;  %p232_p7 = scmp.lt.s32.totalorder %s3540_s29, 3 }
  0x16   : > { %s3542_s12 = smov [#allocation9]   ;;  %s3543_s15 = smov [#allocation10]  }
  0x17   : > { %p3652_p8 = pnand %p2669_p5, %p232_p7  ;;  %s244_s13 = sshll.u32 %s3542_s12, 4  ;;  %s245_s13 = int_to_ptr.vmem [resolvable:$true] %s244_s13 }
  0x18   : > { %s257_s16 = sshll.u32 %s3543_s15, 4  ;;  %s3544_s17 = smov [#allocation12]   ;;  %s258_s16 = int_to_ptr.vmem [resolvable:$true] %s257_s16 }
  0x19   : > { %p3067_p9 = pneg %p3652_p8  ;;  %s270_s18 = sshll.u32 %s3544_s17, 4  ;;  %s271_s18 = int_to_ptr.vmem [resolvable:$true] %s270_s18 }
  0x1a   : > { %s3295_s19 = scalar_lea.vmem %s245_s13, 512  ;;  %p3303_p5 = scmp.lt.s32.totalorder %s245_s13, %s245_s13 }
  0x1b   : > { %p3661_p11 = pnand %p3067_p9, %p4102_p1  ;;  %p3296_p13 = scmp.ne.s32.totalorder %s245_s13, %s3295_s19 }
  0x1c   : > { %p3304_p7 = scmp.lt.s32.totalorder %s3295_s19, %s3295_s19 }
  0x1d   : > { %p3286_p12 = pneg %p3661_p11 }
  0x1e   : > { %p3305_p9 = por %p3304_p7, %p3303_p5 }
  0x1f   : > { %p3298_p0 = pnand %p3296_p13, %p3286_p12 }
  0x21   : > { %p3299_p3 = pneg %p3298_p0 }
  0x23   : > { %p3306_p10 = pnand %p3305_p9, %p3299_p3 }
  0x25   : > { %3309 = shalt.err (!%p3306_p10)
}
  0x26   : > { %s4103_s20 = smov 128   ;;  %s4104_s21 = smov 8  }
  0x27   : > { %s4120_s2 = sld [smem:[#allocation27_spill]]  ;;  %s3321_s8 = scalar_lea.vmem %s258_s16, 512 }
  0x28   : > { %p3322_p13 = scmp.ne.s32.totalorder %s258_s16, %s3321_s8  ;;  %p3329_p3 = scmp.lt.s32.totalorder %s258_s16, %s258_s16 }
  0x29   : > { %p3330_p10 = scmp.lt.s32.totalorder %s3321_s8, %s3321_s8 }
  0x2a   : > { %p3324_p0 = pnand %p3322_p13, %p3286_p12 }
  0x2b   : > { %p3331_p7 = por %p3330_p10, %p3329_p3 }
  0x2c   : > { %p3325_p5 = pneg %p3324_p0 }
  0x2d   : > { %3070 = dma.hbm_to_vmem [thread:$0]  (!%p3661_p11), %s4120_s2, 512, %s245_s13, [#allocation8], %s4103_s20, %s4103_s20, %s4104_s21  }
  0x2e   : > { %p3332_p9 = pnand %p3331_p7, %p3325_p5 }
  0x30   : > { %3335 = shalt.err (!%p3332_p9)
}
  0x31   : > { %s4121_s3 = sld [smem:[#allocation28_spill]]  ;;  %s3347_s13 = scalar_lea.vmem %s271_s18, 512 }
  0x32   : > { %p3348_p1 = scmp.ne.s32.totalorder %s271_s18, %s3347_s13  ;;  %p3355_p3 = scmp.lt.s32.totalorder %s271_s18, %s271_s18 }
  0x33   : > { %p3356_p5 = scmp.lt.s32.totalorder %s3347_s13, %s3347_s13 }
  0x34   : > { %p3350_p13 = pnand %p3348_p1, %p3286_p12 }
  0x35   : > { %p3357_p10 = por %p3356_p5, %p3355_p3 }
  0x36   : > { %p3351_p0 = pneg %p3350_p13 }
  0x37   : > { %3073 = dma.hbm_to_vmem [thread:$0]  (!%p3661_p11), %s4121_s3, 512, %s258_s16, [#allocation11], %s4103_s20, %s4103_s20, %s4104_s21  }
  0x38   : > { %p3358_p7 = pnand %p3357_p10, %p3351_p0 }
  0x3a   : > { %3361 = shalt.err (!%p3358_p7)
}
  0x3b   : > { %s4122_s4 = sld [smem:[#allocation29_spill]]  ;;  %s3547_s16 = smov [#allocation13]  }
  0x3c   : > { %s283_s22 = sshll.u32 %s3547_s16, 4  ;;  %s284_s22 = int_to_ptr.vmem [resolvable:$true] %s283_s22 }
  0x3d   : > { %s3373_s23 = scalar_lea.vmem %s284_s22, 512  ;;  %p3381_p0 = scmp.lt.s32.totalorder %s284_s22, %s284_s22 }
  0x3e   : > { %p3374_p1 = scmp.ne.s32.totalorder %s284_s22, %s3373_s23  ;;  %p3382_p3 = scmp.lt.s32.totalorder %s3373_s23, %s3373_s23 }
  0x40   : > { %p3376_p9 = pnand %p3374_p1, %p3286_p12  ;;  %p3383_p5 = por %p3382_p3, %p3381_p0 }
  0x41   : > { %3076 = dma.hbm_to_vmem [thread:$0]  (!%p3661_p11), %s4122_s4, 512, %s271_s18, [#allocation11], %s4103_s20, %s4103_s20, %s4104_s21  }
  0x42   : > { %p3377_p13 = pneg %p3376_p9 }
  0x44   : > { %p3384_p10 = pnand %p3383_p5, %p3377_p13 }
  0x46   : > { %3387 = shalt.err (!%p3384_p10)
}
  0x47   : > { %s3548_s8 = smov 64   ;;  %s3549_s18 = smov 4  }
  0x48   : > { %s4123_s5 = sld [smem:[#allocation30_spill]]  ;;  %s40_s13 = sadd.s32 1, %s3536_s28 }
  0x49   : > { %s47_s17 = sadd.s32 1, %s3528_s26  ;;  %p42_p12 = scmp.ge.s32.totalorder %s40_s13, 2 }
  0x4a   : > { %p54_p7 = scmp.ne.s32.totalorder %s3528_s26, %s3524_s25  ;;  %p55_p1 = scmp.eq.s32.totalorder %s3540_s29, 0 }
  0x4b   : > { %p3095_p9 = scmp.lt.s32.totalorder %s3540_s29, 2  ;;  %s4147_s13 = smov (%p42_p12, %s40_s13), 0 }
  0x4c   : > { %4124 = sst [smem:[#allocation24_spill]] %s4147_s13  ;;  %p56_p13 = por %p55_p1, %p54_p7 }
  0x4d   : > { %p3718_p0 = por %p219_p2, %p54_p7  ;;  %s44_s19 = ssub.s32 %s3536_s28, %s4147_s13 }
  0x4e   : > { %3079 = dma.hbm_to_vmem [thread:$0]  (!%p3661_p11), %s4123_s5, 512, %s284_s22, [#allocation14], %s3548_s8, %s3548_s8, %s3549_s18  }
  0x4f   : > { %s3725_s16 = sand.u32 1, %s3528_s26   ;;  %p45_p11 = scmp.eq.s32.totalorder %s44_s19, 0 }
  0x50   : > { %s2675_s22 = sshll.u32 %s3725_s16, 4  ;;  %s2778_s23 = sshll.u32 %s3536_s28, 8 }
  0x51   : > { %s3730_s8 = scalar_select %p45_p11, %s3528_s26, %s47_s17  }
  0x52   : > { %s4127_s0 = sld [smem:[#allocation26_spill]]  ;;  %s304_s20 = scalar_lea.vmem [#allocation4], %s2675_s22 }
  0x53   : > { %4126 = sst [smem:[#allocation25_spill]] %s3730_s8  ;;  %s311_s21 = sshll.u32 %s304_s20, 4  ;;  %s312_s21 = int_to_ptr.vmem [resolvable:$true] %s311_s21 }
  0x54   : > { %p3737_p2 = pnand %p3095_p9, %p56_p13  ;;  %s321_s3 = sand.u32 1, %s3540_s29  }
  0x55   : > { %s301_s19 = scalar_lea.sflag [#allocation5], %s3725_s16  ;;  %s3401_s17 = scalar_lea.vmem %s312_s21, 256 }
  0x56   : > { %p3390_p3 = pneg %p3737_p2  ;;  %p3402_p5 = scmp.ne.s32.totalorder %s312_s21, %s3401_s17 }
  0x57   : > { %s3550_s22 = smov [#allocation4]  }
  0x58   : > { %s310_s15 = scalar_lea.hbm %s4127_s0, %s2778_s23  ;;  %p3404_p10 = pnand %p3402_p5, %p3390_p3 }
  0x59   : > { %s3406_s20 = sshll.u32 %s3550_s22, 4  ;;  %s3407_s20 = int_to_ptr.vmem [resolvable:$false] %s3406_s20 }
  0x5a   : > { %p3405_p12 = pneg %p3404_p10  ;;  %s3408_s23 = scalar_lea.vmem %s3407_s20, 512 }
  0x5b   : > { %p3409_p7 = scmp.lt.s32.totalorder %s312_s21, %s3407_s20  ;;  %p3410_p1 = scmp.lt.s32.totalorder %s3408_s23, %s3401_s17 }
  0x5d   : > { %p3411_p9 = por %p3410_p1, %p3409_p7 }
  0x5f   : > { %p3412_p13 = pnand %p3411_p9, %p3405_p12 }
  0x61   : > { %3415 = shalt.err (!%p3412_p13)
}
  0x62   : > { %s4129_s18 = smov 8   ;;  %s4130_s12 = smov 128  }
  0x63   : > { %3083 = dma.hbm_to_vmem [thread:$0]  (!%p3737_p2), %s310_s15, 256, %s312_s21, %s301_s19, %s4130_s12, %s4130_s12, %s4129_s18  }
  0x64   : > { %s2678_s0 = sshll.u32 %s3725_s16, 3  ;;  %s2679_s4 = sshll.u32 %s3536_s28, 7 }
  0x65   : > { %s331_s13 = scalar_lea.hbm %s4095_s1, %s2679_s4  ;;  %s325_s20 = scalar_lea.vmem [#allocation7], %s2678_s0 }
  0x66   : > { %s333_s17 = sshll.u32 %s325_s20, 4  ;;  %s322_s23 = scalar_lea.sflag [#allocation8], %s321_s3  ;;  %s334_s17 = int_to_ptr.vmem [resolvable:$true] %s333_s17 }
  0x67   : > { %s3429_s8 = scalar_lea.vmem %s334_s17, 128  ;;  %s3551_s26 = smov [#allocation7]  }
  0x68   : > { %p3430_p11 = scmp.ne.s32.totalorder %s334_s17, %s3429_s8  ;;  %s3434_s29 = sshll.u32 %s3551_s26, 4  ;;  %s3435_s29 = int_to_ptr.vmem [resolvable:$false] %s3434_s29 }
  0x69   : > { %s3436_s21 = scalar_lea.vmem %s3435_s29, 256  ;;  %p3437_p12 = scmp.lt.s32.totalorder %s334_s17, %s3435_s29 }
  0x6a   : > { %p3432_p5 = pnand %p3430_p11, %p3390_p3  ;;  %p3438_p7 = scmp.lt.s32.totalorder %s3436_s21, %s3429_s8 }
  0x6c   : > { %p3433_p10 = pneg %p3432_p5  ;;  %p3439_p1 = por %p3438_p7, %p3437_p12 }
  0x6e   : > { %p3440_p9 = pnand %p3439_p1, %p3433_p10 }
  0x70   : > { %3443 = shalt.err (!%p3440_p9)
}
  0x71   : > { %3086 = dma.hbm_to_vmem [thread:$0]  (!%p3737_p2), %s331_s13, 128, %s334_s17, %s322_s23  }
  0x72   : > { %342 = sbr.rel (%p3652_p8) target bundleno = 1419 (0x58b), region = 48  ;;  %s3766_s0 = sand.u32 (!%p3652_p8), 1, %s3524_s25  }
  0x73   : > { %s2681_s3 = sshll.u32 (!%p3652_p8), %s3766_s0, 4  ;;  %s345_s4 = scalar_lea.sflag (!%p3652_p8), [#allocation5], %s3766_s0 }
  0x74   : > { %s348_s5 = scalar_lea.vmem (!%p3652_p8), [#allocation4], %s2681_s3 }
  0x77   : > { %3495 = dma.done.wait (%p3642_p4), %s345_s4, 256  }
  0x78   : > { %3497 = vsyncadd (%p3642_p4), %s345_s4, 4294967040  ;;  %s353_s2 = sand.u32 1, %s3633_s30   ;;  %s2682_s26 = sshll.u32 %s3766_s0, 3 }
  0x79   : > { %s354_s29 = scalar_lea.sflag [#allocation8], %s353_s2  ;;  %s3778_s11 = scalar_lea.vmem [#allocation7], %s2682_s26 }
  0x7a   : > { %3499 = dma.done.wait (%p3642_p4), %s354_s29, 128  }
  0x7b   : > { %3501 = vsyncadd (%p3642_p4), %s354_s29, 4294967168  ;;  %p4131_p8 = scmp.eq.s32.totalorder %s3633_s30, 0 }
  0x7d   : > { %3503 = dma.done.wait (%p4131_p8), [#allocation8], 512   ;;  %p4132_p2 = pmov %p4131_p8 }
  0x7f   : > { %3505 = vsyncadd (%p4132_p2), [#allocation8], 4294966784  ;;  %p4133_p3 = pmov %p4132_p2 }
  0x80   : > { %p4134_p13 = pmov %p4132_p2 }
  0x81   : > { %3507 = dma.done.wait (%p4133_p3), [#allocation11], 1024  }
  0x82   : > { %3509 = vsyncadd (%p4134_p13), [#allocation11], 4294966272  ;;  %p4135_p11 = pmov %p4132_p2 }
  0x83   : > { %p4136_p5 = pmov %p4132_p2 }
  0x84   : > { %3511 = dma.done.wait (%p4135_p11), [#allocation14], 512  }
  0x85   : > { %3513 = vsyncadd (%p4136_p5), [#allocation14], 4294966784  ;;  %vm420_vm0 = vcmask 261120   ;;  %v419_v0 = vld [vmem:[#allocation10 + $0x18] sm:$0xff]  ;;  %v418_v1 = vld [vmem:[#allocation10 + $0x10] sm:$0xff]  ;;  %v3552_v7 = vmov 0.0  }
  0x86   : > { %2876 = vmatprep.subr.mxu0 %v419_v0  ;;  %v414_v2 = vld [vmem:[%s348_s5] sm:$0xff]  ;;  %v417_v3 = vld [vmem:[#allocation10 + $0x8] sm:$0xff]  ;;  %v834_v6 = vld [vmem:[#allocation9 + $0x18] sm:$0xff]  ;;  %vm3553_vm1 = vmmov 0   ;;  %vm689_vm2 = vcmask 27648   ;;  %s3554_s30 = smov 116  }
  0x87   : > { %2877 = vmatpush3.msra.mxu0 %v419_v0  ;;  %2884 = vmatprep.mubr.msk.f32.mxu0 %vm420_vm0, %v414_v2  ;;  %v416_v4 = vld [vmem:[#allocation10] sm:$0xff]  ;;  %v415_v5 = vld [vmem:[%s348_s5 + $0x8] sm:$0xff]  ;;  %v833_v8 = vld [vmem:[#allocation9 + $0x10] sm:$0xff]  ;;  %s3555_s9 = smov 124   ;;  %s3556_s13 = smov 112   ;;  %vm977_vm3 = vcmask 31744  }
  0x88   : > { %2878 = vmatprep.subr.mxu0 %v418_v1  ;;  %2895 = vmatprep.mubr.msk.f32.mxu1 %vm420_vm0, %v414_v2  ;;  %v832_v9 = vld [vmem:[#allocation9 + $0x8] sm:$0xff]  ;;  %v831_v10 = vld [vmem:[#allocation9] sm:$0xff]  ;;  %v830_v11 = vld [vmem:[%s3778_s11] sm:$0xff]  ;;  %s3557_s16 = smov 120   ;;  %s3558_s8 = smov 108   ;;  %vm1381_vm4 = vcmask 130048  }
  0x89   : > { %2879 = vmatpush3.msra.mxu0 %v418_v1  ;;  %v505_v12 = vld [vmem:[#allocation12 + $0x18] sm:$0xff]  ;;  %v504_v13 = vld [vmem:[#allocation12 + $0x10] sm:$0xff]  ;;  %v503_v14 = vld [vmem:[#allocation12 + $0x8] sm:$0xff]  ;;  %s3559_s15 = smov 104   ;;  %s3560_s19 = smov 100   ;;  %vm1881_vm5 = vcmask 1043456  }
  0x8a   : > { %2880 = vmatprep.subr.mxu0 %v417_v3  ;;  %2887 = vmatprep.subr.mxu1 %v505_v12  ;;  %v502_v15 = vld [vmem:[#allocation12] sm:$0xff]  ;;  %s2775_s22 = sshll.u32 %s3532_s27, 7  ;;  %s408_s20 = scalar_lea.vmem [#allocation15], %s2682_s26 }
  0x8b   : > { %2881 = vmatpush3.msra.mxu0 %v417_v3  ;;  %2888 = vmatpush3.msra.mxu1 %v505_v12  ;;  %s2526_s17 = sshll.u32 %s408_s20, 4  ;;  %s2524_s3 = scalar_lea.hbm %s4101_s7, %s2775_s22  ;;  %s2527_s17 = int_to_ptr.vmem [resolvable:$true] %s2526_s17 }
  0x8c   : > { %2882 = vmatprep.subr.mxu0 %v416_v4  ;;  %2889 = vmatprep.subr.mxu1 %v504_v13  ;;  %s2512_s4 = scalar_lea.sflag [#allocation6], %s3766_s0  ;;  %s3444_s5 = scalar_lea.vmem %s2527_s17, 128 }
  0x8d   : > { %2883 = vmatpush3.msra.mxu0 %v416_v4  ;;  %2890 = vmatpush3.msra.mxu1 %v504_v13  ;;  %p3445_p4 = scmp.ne.s32.totalorder %s2527_s17, %s3444_s5  ;;  %s3561_s27 = smov [#allocation15]  }
  0x8e   : > { %2885 = vmatmul.mubr.msk.f32.vlgmr.msra.gmra.mxu0 %vm420_vm0, %v415_v5  ;;  %2898 = vmatprep.subr.mxu0 %v3552_v7  ;;  %s3448_s2 = sshll.u32 %s3561_s27, 4  ;;  %s3449_s2 = int_to_ptr.vmem [resolvable:$false] %s3448_s2 }
  0x8f   : > { %2899 = vmatpush3.msra.mxu0 %v834_v6  ;;  %2906 = vmatprep.mubr.msk.f32.mxu0 %vm3553_vm1, %v3552_v7  ;;  %p3446_p10 = pnand %p3445_p4, %p3718_p0  ;;  %s3450_s26 = scalar_lea.vmem %s3449_s2, 256 }
  0x90   : > { %2900 = vmatprep.subr.mxu0 %v3552_v7  ;;  %2891 = vmatprep.subr.mxu1 %v503_v14  ;;  %p3451_p7 = scmp.lt.s32.totalorder %s2527_s17, %s3449_s2  ;;  %p3452_p1 = scmp.lt.s32.totalorder %s3450_s26, %s3444_s5 }
  0x91   : > { %2901 = vmatpush3.msra.mxu0 %v833_v8  ;;  %2892 = vmatpush3.msra.mxu1 %v503_v14  ;;  %p3447_p12 = pneg %p3446_p10 }
  0x92   : > { %2902 = vmatprep.subr.mxu0 %v3552_v7  ;;  %2893 = vmatprep.subr.mxu1 %v502_v15  ;;  %p3453_p9 = por %p3452_p1, %p3451_p7 }
  0x93   : > { %2903 = vmatpush3.msra.mxu0 %v832_v9  ;;  %2894 = vmatpush3.msra.mxu1 %v502_v15 }
  0x94   : > { %2904 = vmatprep.subr.mxu0 %v3552_v7  ;;  %2909 = vmatprep.subr.bf16.mxu1 %v3552_v7  ;;  %p3454_p8 = pnand %p3453_p9, %p3447_p12 }
  0x95   : > { %2905 = vmatpush3.msra.mxu0 %v831_v10  ;;  %2896 = vmatmul.mubr.msk.f32.vlgmr.msra.gmra.mxu1 %vm420_vm0, %v415_v5 }
  0x96   : > { %2907 = vmatmul.mubr.msk.f32.vlgmr.msra.gmra.mxu0 %vm420_vm0, %v830_v11  ;;  %2915 = vmatprep.subr.bf16.mxu0 %v3552_v7 }
  0x97   : > { %2917 = vmatprep.mubr.msk.bf16.mxu0 %vm3553_vm1, %v3552_v7  ;;  %2911 = vmatprep.mubr.msk.bf16.mxu1 %vm3553_vm1, %v3552_v7 }
 0x14e   : > { %v2886_v16 = vpop.f32.mrf.mxu0 }
 0x14f   : > { %v2780_v17 = vpack.c.bf16 %v2886_v16, %v2886_v16 }
 0x150   : > { %v493_v18 = vpop.f32.mrf.mxu0 }
 0x151   : > { %691 = vst.msk [vmem:[#allocation2 + $0x4] sm:$0xf] %vm689_vm2, %v2780_v17  ;;  %v2779_v19 = vpack.c.bf16 %v493_v18, %v493_v18  ;;  %v3176_v20 = vpack.i.bf16 %v2886_v16, %v493_v18 }
 0x153   : > { %690 = vst.msk [vmem:[#allocation2] sm:$0xf] %vm689_vm2, %v2779_v19  ;;  %3177 = vrot.lane.b32.xlu1 %v3176_v20, %s3554_s30  ;;  %3167 = vrot.lane.b32.xlu0 %v3176_v20, %s3555_s9 }
 0x155   : > { %v3835_v27 = vpop.f32.mrf.mxu1 }
 0x156   : > { %v905_v21 = vpop.f32.mrf.mxu0  ;;  %v2796_v28 = vpack.c.bf16 %v3835_v27, %v3835_v27 }
 0x157   : > { %3182 = vrot.lane.b32.xlu1 %v3176_v20, %s3556_s13  ;;  %3172 = vrot.lane.b32.xlu0 %v3176_v20, %s3557_s16  ;;  %v909_v22 = vmul.f32 0.5, %v905_v21  ;;  %v3839_v29 = vpop.f32.mrf.mxu1 }
 0x158   : > { %v2908_v23 = vpop.f32.mrf.mxu0  ;;  %815 = vst.msk [vmem:[#allocation3 + $0x4] sm:$0xf] %vm689_vm2, %v2796_v28  ;;  %v2795_v30 = vpack.c.bf16 %v3839_v29, %v3839_v29 }
 0x159   : > { %v932_v26 = vpack.c.bf16 %v909_v22, %v909_v22 }
 0x15a   : > { %v3236_v24 = vld [vmem:[#allocation2] sm:$0xff]   ;;  %814 = vst.msk [vmem:[#allocation3] sm:$0xf] %vm689_vm2, %v2795_v30 }
 0x15b   : > { %3187 = vrot.lane.b32.xlu0 %v3176_v20, %s3558_s8  ;;  %911 = vrot.lane.b32.xlu1 %v909_v22, %s3555_s9  ;;  %v982_v25 = vsel %vm977_vm3, %v3236_v24, 0 }
 0x15c   : > { %2910 = vmatpush3.bf16.xpose.msra.mxu1 %v982_v25 }
 0x15d   : > { %2921 = vmatprep.subr.bf16.mxu1 %v3552_v7 }
 0x15f   : > { %3192 = vrot.lane.b32.xlu0 %v3176_v20, %s3559_s15  ;;  %3197 = vrot.lane.b32.xlu1 %v3176_v20, %s3560_s19 }
 0x163   : > { %914 = vrot.lane.b32.xlu0 %v909_v22, %s3557_s16  ;;  %917 = vrot.lane.b32.xlu1 %v909_v22, %s3554_s30 }
 0x164   : > { %2912 = vmatmul.mubr.msk.bf16.vlgmr.msra.gmra.mxu1 %vm977_vm3, %v932_v26 }
 0x165   : > { %2923 = vmatprep.mubr.msk.bf16.mxu1 %vm3553_vm1, %v3552_v7 }
 0x167   : > { %920 = vrot.lane.b32.xlu0 %v909_v22, %s3556_s13  ;;  %923 = vrot.lane.b32.xlu1 %v909_v22, %s3558_s8 }
 0x16b   : > { %926 = vrot.lane.b32.xlu0 %v909_v22, %s3559_s15  ;;  %929 = vrot.lane.b32.xlu1 %v909_v22, %s3560_s19 }
 0x1c5   : > { %v3178_v31 = vpop.permute.xlu1 %3177  ;;  %v3168_v32 = vpop.permute.xlu0 %3167 }
 0x1c6   : > { %v3180_v33 = vunpack.i.h.bf16 %v3178_v31  ;;  %v3179_v34 = vunpack.i.l.bf16 %v3178_v31  ;;  %v3170_v35 = vunpack.i.h.bf16 %v3168_v32  ;;  %v3169_v36 = vunpack.i.l.bf16 %v3168_v32 }
 0x1c8   : > { %v2786_v37 = vpack.c.bf16 %v3180_v33, %v3180_v33  ;;  %v2785_v38 = vpack.c.bf16 %v3179_v34, %v3179_v34  ;;  %v2782_v39 = vpack.c.bf16 %v3170_v35, %v3170_v35  ;;  %v2781_v40 = vpack.c.bf16 %v3169_v36, %v3169_v36  ;;  %v3244_v33 = vld [vmem:[#allocation3] sm:$0xff]  }
 0x1c9   : > { %v3183_v41 = vpop.permute.xlu1 %3182  ;;  %v3173_v42 = vpop.permute.xlu0 %3172 }
 0x1ca   : > { %697 = vst.msk [vmem:[#allocation2 + $0x1c] sm:$0xf] %vm689_vm2, %v2786_v37  ;;  %696 = vst.msk [vmem:[#allocation2 + $0x18] sm:$0xf] %vm689_vm2, %v2785_v38  ;;  %v3185_v43 = vunpack.i.h.bf16 %v3183_v41  ;;  %v3184_v44 = vunpack.i.l.bf16 %v3183_v41  ;;  %v3175_v45 = vunpack.i.h.bf16 %v3173_v42  ;;  %v3174_v46 = vunpack.i.l.bf16 %v3173_v42 }
 0x1cb   : > { %693 = vst.msk [vmem:[#allocation2 + $0xc] sm:$0xf] %vm689_vm2, %v2782_v39  ;;  %692 = vst.msk [vmem:[#allocation2 + $0x8] sm:$0xf] %vm689_vm2, %v2781_v40 }
 0x1cc   : > { %v2788_v47 = vpack.c.bf16 %v3185_v43, %v3185_v43  ;;  %v2787_v48 = vpack.c.bf16 %v3184_v44, %v3184_v44  ;;  %v2784_v49 = vpack.c.bf16 %v3175_v45, %v3175_v45  ;;  %v2783_v50 = vpack.c.bf16 %v3174_v46, %v3174_v46 }
 0x1cd   : > { %v3188_v51 = vpop.permute.xlu0 %3187  ;;  %v912_v52 = vpop.permute.xlu1 %911 }
 0x1ce   : > { %699 = vst.msk [vmem:[#allocation2 + $0x24] sm:$0xf] %vm689_vm2, %v2788_v47  ;;  %698 = vst.msk [vmem:[#allocation2 + $0x20] sm:$0xf] %vm689_vm2, %v2787_v48  ;;  %v3190_v53 = vunpack.i.h.bf16 %v3188_v51  ;;  %v3189_v54 = vunpack.i.l.bf16 %v3188_v51  ;;  %v933_v6 = vpack.c.bf16 %v912_v52, %v912_v52 }
 0x1cf   : > { %695 = vst.msk [vmem:[#allocation2 + $0x14] sm:$0xf] %vm689_vm2, %v2784_v49  ;;  %694 = vst.msk [vmem:[#allocation2 + $0x10] sm:$0xf] %vm689_vm2, %v2783_v50 }
 0x1d0   : > { %v2790_v55 = vpack.c.bf16 %v3190_v53, %v3190_v53  ;;  %v2789_v56 = vpack.c.bf16 %v3189_v54, %v3189_v54 }
 0x1d1   : > { %v3193_v57 = vpop.permute.xlu0 %3192  ;;  %v3198_v58 = vpop.permute.xlu1 %3197  ;;  %v3239_v9 = vld [vmem:[#allocation2 + $0x18] sm:$0xff]  }
 0x1d2   : > { %v3237_v59 = vld [vmem:[#allocation2 + $0x8] sm:$0xff]   ;;  %701 = vst.msk [vmem:[#allocation2 + $0x2c] sm:$0xf] %vm689_vm2, %v2790_v55  ;;  %700 = vst.msk [vmem:[#allocation2 + $0x28] sm:$0xf] %vm689_vm2, %v2789_v56  ;;  %v3195_v60 = vunpack.i.h.bf16 %v3193_v57  ;;  %v3194_v61 = vunpack.i.l.bf16 %v3193_v57  ;;  %v3200_v62 = vunpack.i.h.bf16 %v3198_v58  ;;  %v3199_v63 = vunpack.i.l.bf16 %v3198_v58 }
 0x1d3   : > { %v1033_v0 = vsel %vm977_vm3, %v3237_v59, 0  ;;  %v1135_v10 = vsel %vm977_vm3, %v3239_v9, 0 }
 0x1d4   : > { %v2792_v1 = vpack.c.bf16 %v3195_v60, %v3195_v60  ;;  %v2791_v2 = vpack.c.bf16 %v3194_v61, %v3194_v61  ;;  %v2794_v3 = vpack.c.bf16 %v3200_v62, %v3200_v62  ;;  %v2793_v4 = vpack.c.bf16 %v3199_v63, %v3199_v63  ;;  %2916 = vmatpush3.bf16.xpose.msra.mxu0 %v1033_v0 }
 0x1d5   : > { %2927 = vmatprep.subr.bf16.mxu0 %v3552_v7  ;;  %v3240_v11 = vld [vmem:[#allocation2 + $0x20] sm:$0xff]   ;;  %v915_v12 = vpop.permute.xlu0 %914  ;;  %v918_v16 = vpop.permute.xlu1 %917 }
 0x1d6   : > { %v3238_v5 = vld [vmem:[#allocation2 + $0x10] sm:$0xff]   ;;  %703 = vst.msk [vmem:[#allocation2 + $0x34] sm:$0xf] %vm689_vm2, %v2792_v1  ;;  %702 = vst.msk [vmem:[#allocation2 + $0x30] sm:$0xf] %vm689_vm2, %v2791_v2  ;;  %v934_v13 = vpack.c.bf16 %v915_v12, %v915_v12  ;;  %v1186_v14 = vsel %vm977_vm3, %v3240_v11, 0  ;;  %v935_v17 = vpack.c.bf16 %v918_v16, %v918_v16  ;;  %v3905_v11 = vpack.i.bf16 %v3835_v27, %v3839_v29 }
 0x1d7   : > { %705 = vst.msk [vmem:[#allocation2 + $0x3c] sm:$0xf] %vm689_vm2, %v2794_v3  ;;  %704 = vst.msk [vmem:[#allocation2 + $0x38] sm:$0xf] %vm689_vm2, %v2793_v4  ;;  %v1084_v8 = vsel %vm977_vm3, %v3238_v5, 0 }
 0x1d8   : > { %2922 = vmatpush3.bf16.xpose.msra.mxu1 %v1084_v8 }
 0x1d9   : > { %2933 = vmatprep.subr.bf16.mxu1 %v3552_v7  ;;  %v3241_v15 = vld [vmem:[#allocation2 + $0x28] sm:$0xff]   ;;  %v921_v18 = vpop.permute.xlu0 %920  ;;  %v924_v22 = vpop.permute.xlu1 %923 }
 0x1da   : > { %v1237_v19 = vsel %vm977_vm3, %v3241_v15, 0  ;;  %v936_v21 = vpack.c.bf16 %v921_v18, %v921_v18  ;;  %v937_v25 = vpack.c.bf16 %v924_v22, %v924_v22 }
 0x1db   : > { %2918 = vmatmul.mubr.msk.bf16.vlgmr.msra.gmra.mxu0 %vm977_vm3, %v933_v6 }
 0x1dc   : > { %2928 = vmatpush3.bf16.xpose.msra.mxu0 %v1135_v10  ;;  %2929 = vmatprep.mubr.msk.bf16.mxu0 %vm3553_vm1, %v3552_v7 }
 0x1dd   : > { %2939 = vmatprep.subr.bf16.mxu0 %v3552_v7  ;;  %v3242_v20 = vld [vmem:[#allocation2 + $0x30] sm:$0xff]   ;;  %v927_v26 = vpop.permute.xlu0 %926  ;;  %v930_v31 = vpop.permute.xlu1 %929 }
 0x1de   : > { %v1288_v23 = vsel %vm977_vm3, %v3242_v20, 0  ;;  %v3243_v24 = vld [vmem:[#allocation2 + $0x38] sm:$0xff]   ;;  %v938_v30 = vpack.c.bf16 %v927_v26, %v927_v26  ;;  %v939_v32 = vpack.c.bf16 %v930_v31, %v930_v31 }
 0x1df   : > { %2924 = vmatmul.mubr.msk.bf16.vlgmr.msra.gmra.mxu1 %vm977_vm3, %v934_v13  ;;  %v1339_v28 = vsel %vm977_vm3, %v3243_v24, 0 }
 0x1e0   : > { %2934 = vmatpush3.bf16.xpose.msra.mxu1 %v1186_v14  ;;  %2935 = vmatprep.mubr.msk.bf16.mxu1 %vm3553_vm1, %v3552_v7 }
 0x1e1   : > { %2945 = vmatprep.subr.bf16.mxu1 %v3552_v7 }
 0x1e3   : > { %2930 = vmatmul.mubr.msk.bf16.vlgmr.msra.gmra.mxu0 %vm977_vm3, %v935_v17 }
 0x1e4   : > { %2940 = vmatpush3.bf16.xpose.msra.mxu0 %v1237_v19  ;;  %2941 = vmatprep.mubr.msk.bf16.mxu0 %vm3553_vm1, %v3552_v7 }
 0x1e5   : > { %2951 = vmatprep.subr.bf16.mxu0 %v3552_v7 }
 0x1e7   : > { %2936 = vmatmul.mubr.msk.bf16.vlgmr.msra.gmra.mxu1 %vm977_vm3, %v936_v21 }
 0x1e8   : > { %2946 = vmatpush3.bf16.xpose.msra.mxu1 %v1288_v23  ;;  %2947 = vmatprep.mubr.msk.bf16.mxu1 %vm3553_vm1, %v3552_v7 }
 0x1e9   : > { %2957 = vmatprep.subr.bf16.mxu1 %v3552_v7 }
 0x1eb   : > { %2942 = vmatmul.mubr.msk.bf16.vlgmr.msra.gmra.mxu0 %vm977_vm3, %v937_v25 }
 0x1ec   : > { %2952 = vmatpush3.bf16.xpose.msra.mxu0 %v1339_v28  ;;  %2953 = vmatprep.mubr.msk.bf16.mxu0 %vm3553_vm1, %v3552_v7 }
 0x1ed   : > { %2963 = vmatprep.subr.bf16.mxu0 %v3552_v7 }
 0x1ef   : > { %2948 = vmatmul.mubr.msk.bf16.vlgmr.msra.gmra.mxu1 %vm977_vm3, %v938_v30 }
 0x1f0   : > { %2959 = vmatprep.mubr.msk.bf16.mxu1 %vm3553_vm1, %v3552_v7  ;;  %2958 = vmatpush3.bf16.msra.mxu1 %v3244_v33 }
 0x1f1   : > { %2969 = vmatprep.subr.bf16.mxu1 %v3552_v7 }
 0x1f3   : > { %2954 = vmatmul.mubr.msk.bf16.vlgmr.msra.gmra.mxu0 %vm977_vm3, %v939_v32 }
 0x1f4   : > { %2965 = vmatprep.mubr.msk.bf16.mxu0 %vm3553_vm1, %v3552_v7 }
 0x224   : > { %v1018_v34 = vpop.f32.mrf.mxu1 }
 0x225   : > { %v1382_v35 = vsel %vm1381_vm4, %v1018_v34, -inf }
 0x226   : > { %1383 = vmax.xlane.f32.xlu0 %v1382_v35  ;;  %v2913_v36 = vpop.f32.mrf.mxu1 }
 0x228   : > { %v1021_v37 = vpop.f32.mrf.mxu1 }
 0x22a   : > { %v2914_v38 = vpop.f32.mrf.mxu1 }
 0x29b   : > { %v1069_v39 = vpop.f32.mrf.mxu0 }
 0x29c   : > { %v1385_v40 = vsel %vm1381_vm4, %v1069_v39, -inf }
 0x29d   : > { %1386 = vmax.xlane.f32.xlu1 %v1385_v40  ;;  %v2919_v41 = vpop.f32.mrf.mxu0 }
 0x29f   : > { %v1072_v42 = vpop.f32.mrf.mxu0  ;;  %v1120_v43 = vpop.f32.mrf.mxu1 }
 0x2a0   : > { %v1388_v44 = vsel %vm1381_vm4, %v1120_v43, -inf }
 0x2a1   : > { %v2920_v45 = vpop.f32.mrf.mxu0  ;;  %1389 = vmax.xlane.f32.xlu0 %v1388_v44  ;;  %v2925_v46 = vpop.f32.mrf.mxu1 }
 0x2a3   : > { %v1123_v47 = vpop.f32.mrf.mxu1  ;;  %v1171_v48 = vpop.f32.mrf.mxu0 }
 0x2a4   : > { %v1391_v49 = vsel %vm1381_vm4, %v1171_v48, -inf }
 0x2a5   : > { %v2931_v50 = vpop.f32.mrf.mxu0  ;;  %1392 = vmax.xlane.f32.xlu0 %v1391_v49  ;;  %v2926_v51 = vpop.f32.mrf.mxu1 }
 0x2a7   : > { %v1174_v52 = vpop.f32.mrf.mxu0  ;;  %v1222_v53 = vpop.f32.mrf.mxu1 }
 0x2a8   : > { %v1394_v54 = vsel %vm1381_vm4, %v1222_v53, -inf }
 0x2a9   : > { %v2932_v55 = vpop.f32.mrf.mxu0  ;;  %1395 = vmax.xlane.f32.xlu1 %v1394_v54  ;;  %v2937_v56 = vpop.f32.mrf.mxu1 }
 0x2ab   : > { %v1225_v57 = vpop.f32.mrf.mxu1  ;;  %v1273_v58 = vpop.f32.mrf.mxu0 }
 0x2ac   : > { %v1397_v59 = vsel %vm1381_vm4, %v1273_v58, -inf }
 0x2ad   : > { %v2943_v60 = vpop.f32.mrf.mxu0  ;;  %1398 = vmax.xlane.f32.xlu0 %v1397_v59  ;;  %v2938_v61 = vpop.f32.mrf.mxu1 }
 0x2af   : > { %v1276_v62 = vpop.f32.mrf.mxu0  ;;  %v1324_v63 = vpop.f32.mrf.mxu1 }
 0x2b0   : > { %v1400_v1 = vsel %vm1381_vm4, %v1324_v63, -inf  ;;  %v1384_v12 = vpop.xlane.xlu0 %1383 }
 0x2b1   : > { %v2944_v0 = vpop.f32.mrf.mxu0  ;;  %1401 = vmax.xlane.f32.xlu1 %v1400_v1  ;;  %v2949_v2 = vpop.f32.mrf.mxu1  ;;  %v1406_v13 = vsub.f32 %v1018_v34, %v1384_v12 }
 0x2b3   : > { %v1375_v3 = vpop.f32.mrf.mxu0  ;;  %v1327_v4 = vpop.f32.mrf.mxu1  ;;  %v1414_v14 = vmul.f32 1.442695, %v1406_v13 }
 0x2b4   : > { %v1403_v5 = vsel %vm1381_vm4, %v1375_v3, -inf }
 0x2b5   : > { %v2955_v6 = vpop.f32.mrf.mxu0  ;;  %1404 = vmax.xlane.f32.xlu0 %v1403_v5  ;;  %v2950_v8 = vpop.f32.mrf.mxu1  ;;  %3252 = vpow2.f32 %v1414_v14 }
 0x2b7   : > { %v1378_v9 = vpop.f32.mrf.mxu0 }
 0x2b9   : > { %v2956_v10 = vpop.f32.mrf.mxu0 }
 0x2c2   : > { %3207 = vrot.lane.b32.xlu1 %v3905_v11, %s3557_s16  ;;  %v3915_v15 = vpop.eup %3252 }
 0x2c3   : > { %v1430_v27 = vsel %vm1381_vm4, %v3915_v15, 0.0 }
 0x2c6   : > { %3212 = vrot.lane.b32.xlu1 %v3905_v11, %s3554_s30 }
 0x2cb   : > { %3202 = vrot.lane.b32.xlu0 %v3905_v11, %s3555_s9 }
 0x2cf   : > { %3217 = vrot.lane.b32.xlu0 %v3905_v11, %s3556_s13 }
 0x2ea   : > { %1431 = vadd.xlane.f32.xlu1 %v1430_v27 }
 0x326   : > { %v1387_v29 = vpop.xlane.xlu1 %1386 }
 0x327   : > { %v1407_v16 = vsub.f32 %v1069_v39, %v1387_v29 }
 0x329   : > { %v1416_v17 = vmul.f32 1.442695, %v1407_v16 }
 0x32a   : > { %v1390_v18 = vpop.xlane.xlu0 %1389 }
 0x32b   : > { %3254 = vpow2.f32 %v1416_v17  ;;  %v1408_v19 = vsub.f32 %v1120_v43, %v1390_v18 }
 0x32d   : > { %v1418_v20 = vmul.f32 1.442695, %v1408_v19 }
 0x32e   : > { %v1393_v21 = vpop.xlane.xlu0 %1392 }
 0x32f   : > { %3256 = vpow2.f32 %v1418_v20  ;;  %v1409_v22 = vsub.f32 %v1171_v48, %v1393_v21 }
 0x331   : > { %v1420_v23 = vmul.f32 1.442695, %v1409_v22 }
 0x332   : > { %v1396_v24 = vpop.xlane.xlu1 %1395 }
 0x333   : > { %3258 = vpow2.f32 %v1420_v23  ;;  %v1410_v25 = vsub.f32 %v1222_v53, %v1396_v24 }
 0x335   : > { %v1422_v26 = vmul.f32 1.442695, %v1410_v25 }
 0x336   : > { %v1399_v28 = vpop.xlane.xlu0 %1398 }
 0x337   : > { %3260 = vpow2.f32 %v1422_v26  ;;  %v1411_v30 = vsub.f32 %v1273_v58, %v1399_v28 }
 0x338   : > { %v3919_v31 = vpop.eup %3254 }
 0x339   : > { %v1424_v32 = vmul.f32 1.442695, %v1411_v30  ;;  %v1433_v33 = vsel %vm1381_vm4, %v3919_v31, 0.0 }
 0x33a   : > { %1434 = vadd.xlane.f32.xlu0 %v1433_v33  ;;  %v1402_v34 = vpop.xlane.xlu1 %1401 }
 0x33b   : > { %3262 = vpow2.f32 %v1424_v32  ;;  %v1412_v36 = vsub.f32 %v1324_v63, %v1402_v34 }
 0x33c   : > { %v3923_v35 = vpop.eup %3256 }
 0x33d   : > { %v1436_v37 = vsel %vm1381_vm4, %v3923_v35, 0.0  ;;  %v1426_v38 = vmul.f32 1.442695, %v1412_v36 }
 0x33e   : > { %v1405_v39 = vpop.xlane.xlu0 %1404  ;;  %1437 = vadd.xlane.f32.xlu1 %v1436_v37  ;;  %v3208_v41 = vpop.permute.xlu1 %3207 }
 0x33f   : > { %v1413_v40 = vsub.f32 %v1375_v3, %v1405_v39  ;;  %3264 = vpow2.f32 %v1426_v38  ;;  %v3210_v43 = vunpack.i.h.bf16 %v3208_v41  ;;  %v3209_v44 = vunpack.i.l.bf16 %v3208_v41 }
 0x340   : > { %v3927_v42 = vpop.eup %3258 }
 0x341   : > { %v1428_v45 = vmul.f32 1.442695, %v1413_v40  ;;  %v1439_v46 = vsel %vm1381_vm4, %v3927_v42, 0.0  ;;  %v2800_v47 = vpack.c.bf16 %v3210_v43, %v3210_v43  ;;  %v2799_v48 = vpack.c.bf16 %v3209_v44, %v3209_v44 }
 0x342   : > { %1440 = vadd.xlane.f32.xlu0 %v1439_v46  ;;  %v3203_v49 = vpop.permute.xlu0 %3202  ;;  %v3213_v52 = vpop.permute.xlu1 %3212 }
 0x343   : > { %3266 = vpow2.f32 %v1428_v45  ;;  %v3205_v50 = vunpack.i.h.bf16 %v3203_v49  ;;  %v3204_v51 = vunpack.i.l.bf16 %v3203_v49  ;;  %819 = vst.msk [vmem:[#allocation3 + $0x14] sm:$0xf] %vm689_vm2, %v2800_v47  ;;  %818 = vst.msk [vmem:[#allocation3 + $0x10] sm:$0xf] %vm689_vm2, %v2799_v48  ;;  %v3215_v54 = vunpack.i.h.bf16 %v3213_v52 }
 0x344   : > { %v3931_v53 = vpop.eup %3260  ;;  %v3214_v55 = vunpack.i.l.bf16 %v3213_v52 }
 0x345   : > { %v2798_v56 = vpack.c.bf16 %v3205_v50, %v3205_v50  ;;  %v2797_v57 = vpack.c.bf16 %v3204_v51, %v3204_v51  ;;  %v1442_v58 = vsel %vm1381_vm4, %v3931_v53, 0.0  ;;  %v2802_v59 = vpack.c.bf16 %v3215_v54, %v3215_v54 }
 0x346   : > { %v2801_v60 = vpack.c.bf16 %v3214_v55, %v3214_v55  ;;  %v3218_v61 = vpop.permute.xlu0 %3217  ;;  %1443 = vadd.xlane.f32.xlu1 %v1442_v58 }
 0x347   : > { %817 = vst.msk [vmem:[#allocation3 + $0xc] sm:$0xf] %vm689_vm2, %v2798_v56  ;;  %816 = vst.msk [vmem:[#allocation3 + $0x8] sm:$0xf] %vm689_vm2, %v2797_v57  ;;  %v3220_v62 = vunpack.i.h.bf16 %v3218_v61  ;;  %v3219_v63 = vunpack.i.l.bf16 %v3218_v61  ;;  %v1870_v56 = vld [vmem:[#allocation13] sm:$0xf] }
 0x348   : > { %v3939_v0 = vpop.eup %3262  ;;  %821 = vst.msk [vmem:[#allocation3 + $0x1c] sm:$0xf] %vm689_vm2, %v2802_v59  ;;  %820 = vst.msk [vmem:[#allocation3 + $0x18] sm:$0xf] %vm689_vm2, %v2801_v60 }
 0x349   : > { %v2804_v1 = vpack.c.bf16 %v3220_v62, %v3220_v62  ;;  %v2803_v2 = vpack.c.bf16 %v3219_v63, %v3219_v63  ;;  %v1445_v3 = vsel %vm1381_vm4, %v3939_v0, 0.0 }
 0x34a   : > { %1446 = vadd.xlane.f32.xlu1 %v1445_v3  ;;  %v3246_v27 = vld [vmem:[#allocation3 + $0x10] sm:$0xff]  }
 0x34b   : > { %823 = vst.msk [vmem:[#allocation3 + $0x24] sm:$0xf] %vm689_vm2, %v2804_v1  ;;  %822 = vst.msk [vmem:[#allocation3 + $0x20] sm:$0xf] %vm689_vm2, %v2803_v2  ;;  %v1871_v1 = vld [vmem:[#allocation13 + $0x4] sm:$0xf] }
 0x34c   : > { %v3947_v4 = vpop.eup %3264 }
 0x34d   : > { %v1448_v5 = vsel %vm1381_vm4, %v3947_v4, 0.0 }
 0x34e   : > { %v3245_v6 = vld [vmem:[#allocation3 + $0x8] sm:$0xff]   ;;  %1449 = vadd.xlane.f32.xlu0 %v1448_v5 }
 0x34f   : > { %2964 = vmatpush3.bf16.msra.mxu0 %v3245_v6  ;;  %v3247_v21 = vld [vmem:[#allocation3 + $0x18] sm:$0xff]  }
 0x350   : > { %v3951_v8 = vpop.eup %3266  ;;  %2975 = vmatprep.subr.bf16.mxu0 %v3552_v7  ;;  %v1873_v6 = vld [vmem:[#allocation13 + $0xc] sm:$0xf] }
 0x351   : > { %v1451_v9 = vsel %vm1381_vm4, %v3951_v8, 0.0 }
 0x352   : > { %1452 = vadd.xlane.f32.xlu1 %v1451_v9  ;;  %v3248_v28 = vld [vmem:[#allocation3 + $0x20] sm:$0xff]  }
 0x363   : > { %3222 = vrot.lane.b32.xlu1 %v3905_v11, %s3558_s8 }
 0x364   : > { %3227 = vrot.lane.b32.xlu0 %v3905_v11, %s3559_s15 }
 0x368   : > { %3232 = vrot.lane.b32.xlu0 %v3905_v11, %s3560_s19 }
 0x373   : > { %v1432_v10 = vpop.xlane.xlu1 %1431 }
 0x374   : > { %3268 = vrcp.f32 %v1432_v10  ;;  %v1874_v10 = vld [vmem:[#allocation13 + $0x10] sm:$0xf] }
 0x381   : > { %v3269_v12 = vpop.eup %3268 }
 0x382   : > { %v1462_v13 = vmul.f32 %v3269_v12, %v3915_v15 }
 0x384   : > { %v1470_v14 = vpack.c.bf16 %v1462_v13, %v1462_v13 }
 0x386   : > { %2960 = vmatmul.mubr.msk.bf16.vlgmr.msra.gmra.mxu1 %vm1381_vm4, %v1470_v14 }
 0x387   : > { %2970 = vmatpush3.bf16.msra.mxu1 %v3246_v27  ;;  %2971 = vmatprep.mubr.msk.bf16.mxu1 %vm3553_vm1, %v3552_v7 }
 0x388   : > { %2981 = vmatprep.subr.bf16.mxu1 %v3552_v7 }
 0x3c3   : > { %v1435_v29 = vpop.xlane.xlu0 %1434 }
 0x3c4   : > { %3270 = vrcp.f32 %v1435_v29  ;;  %v1875_v29 = vld [vmem:[#allocation13 + $0x14] sm:$0xf] }
 0x3c7   : > { %v1438_v16 = vpop.xlane.xlu1 %1437 }
 0x3c8   : > { %3272 = vrcp.f32 %v1438_v16 }
 0x3cb   : > { %v1441_v11 = vpop.xlane.xlu0 %1440 }
 0x3cc   : > { %3274 = vrcp.f32 %v1441_v11 }
 0x3cf   : > { %v1444_v17 = vpop.xlane.xlu1 %1443 }
 0x3d0   : > { %3276 = vrcp.f32 %v1444_v17 }
 0x3d1   : > { %v3271_v18 = vpop.eup %3270 }
 0x3d2   : > { %v1463_v15 = vmul.f32 %v3271_v18, %v3919_v31 }
 0x3d3   : > { %v1447_v23 = vpop.xlane.xlu1 %1446 }
 0x3d4   : > { %v1471_v19 = vpack.c.bf16 %v1463_v15, %v1463_v15  ;;  %v1876_v15 = vld [vmem:[#allocation13 + $0x18] sm:$0xf] }
 0x3d5   : > { %v3273_v20 = vpop.eup %3272 }
 0x3d6   : > { %2966 = vmatmul.mubr.msk.bf16.vlgmr.msra.gmra.mxu0 %vm1381_vm4, %v1471_v19  ;;  %v1464_v22 = vmul.f32 %v3273_v20, %v3923_v35 }
 0x3d7   : > { %2976 = vmatpush3.bf16.msra.mxu0 %v3247_v21  ;;  %2977 = vmatprep.mubr.msk.bf16.mxu0 %vm3553_vm1, %v3552_v7  ;;  %v1450_v24 = vpop.xlane.xlu0 %1449 }
 0x3d8   : > { %v1472_v25 = vpack.c.bf16 %v1464_v22, %v1464_v22  ;;  %2987 = vmatprep.subr.bf16.mxu0 %v3552_v7  ;;  %3278 = vrcp.f32 %v1450_v24 }
 0x3d9   : > { %v3275_v26 = vpop.eup %3274  ;;  %3280 = vrcp.f32 %v1447_v23 }
 0x3da   : > { %2972 = vmatmul.mubr.msk.bf16.vlgmr.msra.gmra.mxu1 %vm1381_vm4, %v1472_v25  ;;  %v1465_v30 = vmul.f32 %v3275_v26, %v3927_v42 }
 0x3db   : > { %2982 = vmatpush3.bf16.msra.mxu1 %v3248_v28  ;;  %v1453_v31 = vpop.xlane.xlu1 %1452  ;;  %2983 = vmatprep.mubr.msk.bf16.mxu1 %vm3553_vm1, %v3552_v7  ;;  %v3228_v32 = vpop.permute.xlu0 %3227  ;;  %v1877_v28 = vld [vmem:[#allocation13 + $0x1c] sm:$0xf] }
 0x3dc   : > { %v1473_v33 = vpack.c.bf16 %v1465_v30, %v1465_v30  ;;  %2993 = vmatprep.subr.bf16.mxu1 %v3552_v7  ;;  %v3230_v35 = vunpack.i.h.bf16 %v3228_v32  ;;  %v3229_v36 = vunpack.i.l.bf16 %v3228_v32  ;;  %3282 = vrcp.f32 %v1453_v31 }
 0x3dd   : > { %v3277_v34 = vpop.eup %3276 }
 0x3de   : > { %2978 = vmatmul.mubr.msk.bf16.vlgmr.msra.gmra.mxu0 %vm1381_vm4, %v1473_v33  ;;  %v1466_v37 = vmul.f32 %v3277_v34, %v3931_v53  ;;  %v2808_v38 = vpack.c.bf16 %v3230_v35, %v3230_v35  ;;  %v2807_v39 = vpack.c.bf16 %v3229_v36, %v3229_v36 }
 0x3df   : > { %v3223_v40 = vpop.permute.xlu1 %3222  ;;  %2989 = vmatprep.mubr.msk.bf16.mxu0 %vm3553_vm1, %v3552_v7  ;;  %v3233_v41 = vpop.permute.xlu0 %3232 }
 0x3e0   : > { %v3225_v42 = vunpack.i.h.bf16 %v3223_v40  ;;  %v3224_v43 = vunpack.i.l.bf16 %v3223_v40  ;;  %v1474_v44 = vpack.c.bf16 %v1466_v37, %v1466_v37  ;;  %827 = vst.msk [vmem:[#allocation3 + $0x34] sm:$0xf] %vm689_vm2, %v2808_v38  ;;  %826 = vst.msk [vmem:[#allocation3 + $0x30] sm:$0xf] %vm689_vm2, %v2807_v39  ;;  %v3235_v45 = vunpack.i.h.bf16 %v3233_v41 }
 0x3e1   : > { %v3234_v46 = vunpack.i.l.bf16 %v3233_v41 }
 0x3e2   : > { %v2806_v47 = vpack.c.bf16 %v3225_v42, %v3225_v42  ;;  %v2805_v48 = vpack.c.bf16 %v3224_v43, %v3224_v43  ;;  %2984 = vmatmul.mubr.msk.bf16.vlgmr.msra.gmra.mxu1 %vm1381_vm4, %v1474_v44  ;;  %v2810_v49 = vpack.c.bf16 %v3235_v45, %v3235_v45 }
 0x3e3   : > { %v2809_v50 = vpack.c.bf16 %v3234_v46, %v3234_v46  ;;  %2995 = vmatprep.mubr.msk.bf16.mxu1 %vm3553_vm1, %v3552_v7 }
 0x3e4   : > { %825 = vst.msk [vmem:[#allocation3 + $0x2c] sm:$0xf] %vm689_vm2, %v2806_v47  ;;  %824 = vst.msk [vmem:[#allocation3 + $0x28] sm:$0xf] %vm689_vm2, %v2805_v48 }
 0x3e5   : > { %829 = vst.msk [vmem:[#allocation3 + $0x3c] sm:$0xf] %vm689_vm2, %v2810_v49  ;;  %828 = vst.msk [vmem:[#allocation3 + $0x38] sm:$0xf] %vm689_vm2, %v2809_v50  ;;  %v3279_v51 = vpop.eup %3278 }
 0x3e6   : > { %v3281_v52 = vpop.eup %3280  ;;  %v1468_v53 = vmul.f32 %v3279_v51, %v3947_v4 }
 0x3e7   : > { %v3249_v54 = vld [vmem:[#allocation3 + $0x30] sm:$0xff]   ;;  %v1467_v55 = vmul.f32 %v3281_v52, %v3939_v0  ;;  %v1872_v0 = vld [vmem:[#allocation13 + $0x8] sm:$0xf] }
 0x3e8   : > { %2994 = vmatpush3.bf16.msra.mxu1 %v3249_v54  ;;  %v1476_v57 = vpack.c.bf16 %v1468_v53, %v1468_v53 }
 0x3e9   : > { %3005 = vmatprep.subr.mxu1 %v3552_v7  ;;  %v1475_v59 = vpack.c.bf16 %v1467_v55, %v1467_v55  ;;  %v3283_v60 = vpop.eup %3282 }
 0x3ea   : > { %v1469_v62 = vmul.f32 %v3283_v60, %v3951_v8 }
 0x3eb   : > { %v3250_v58 = vld [vmem:[#allocation3 + $0x28] sm:$0xff]   ;;  %2996 = vmatmul.mubr.msk.bf16.vlgmr.msra.gmra.mxu1 %vm1381_vm4, %v1476_v57 }
 0x3ec   : > { %2988 = vmatpush3.bf16.msra.mxu0 %v3250_v58  ;;  %3006 = vmatpush3.msk.msra.mxu1 %vm1881_vm5, %v1870_v56  ;;  %v3251_v61 = vld [vmem:[#allocation3 + $0x38] sm:$0xff]   ;;  %v1477_v63 = vpack.c.bf16 %v1469_v62, %v1469_v62 }
 0x3ed   : > { %2999 = vmatprep.subr.bf16.mxu0 %v3552_v7  ;;  %3007 = vmatprep.mubr.msk.f32.mxu1 %vm3553_vm1, %v3552_v7 }
 0x3ee   : > { %3010 = vmatprep.subr.mxu1 %v3552_v7 }
 0x3ef   : > { %2990 = vmatmul.mubr.msk.bf16.vlgmr.msra.gmra.mxu0 %vm1381_vm4, %v1475_v59 }
 0x3f0   : > { %3000 = vmatpush3.bf16.msra.mxu0 %v3251_v61  ;;  %3001 = vmatprep.mubr.msk.bf16.mxu0 %vm3553_vm1, %v3552_v7 }
 0x3f1   : > { %3015 = vmatprep.subr.mxu0 %v3552_v7 }
 0x3f7   : > { %3002 = vmatmul.mubr.msk.bf16.vlgmr.msra.gmra.mxu0 %vm1381_vm4, %v1477_v63 }
 0x3f8   : > { %3017 = vmatprep.mubr.msk.f32.mxu0 %vm3553_vm1, %v3552_v7  ;;  %3016 = vmatpush3.msk.msra.mxu0 %vm1881_vm5, %v1872_v0 }
 0x3f9   : > { %3025 = vmatprep.subr.mxu0 %v3552_v7 }
 0x446   : > { %v1521_v2 = vpop.f32.mrf.mxu1 }
 0x447   : > { %3008 = vmatmul.mubr.msk.f32.vlgmr.msra.gmra.mxu1 %vm977_vm3, %v1521_v2 }
 0x448   : > { %v2961_v3 = vpop.f32.mrf.mxu1  ;;  %3011 = vmatpush3.msk.msra.mxu1 %vm1881_vm5, %v1871_v1  ;;  %3012 = vmatprep.mubr.msk.f32.mxu1 %vm3553_vm1, %v3552_v7 }
 0x449   : > { %3020 = vmatprep.subr.mxu1 %v3552_v7 }
 0x44a   : > { %v1524_v4 = vpop.f32.mrf.mxu1 }
 0x44b   : > { %v2773_v4 = vld [vmem:[%s4100_s6] ss:$0 sm:$0xff] }
 0x44c   : > { %v2962_v5 = vpop.f32.mrf.mxu1 }
 0x496   : > { %v1570_v8 = vpop.f32.mrf.mxu0 }
 0x497   : > { %3013 = vmatmul.mubr.msk.f32.vlgmr.msra.gmra.mxu1 %vm977_vm3, %v1570_v8 }
 0x498   : > { %v2967_v9 = vpop.f32.mrf.mxu0  ;;  %3021 = vmatpush3.msk.msra.mxu1 %vm1881_vm5, %v1873_v6  ;;  %3022 = vmatprep.mubr.msk.f32.mxu1 %vm3553_vm1, %v3552_v7 }
 0x499   : > { %3030 = vmatprep.subr.mxu1 %v3552_v7 }
 0x49a   : > { %v1573_v12 = vpop.f32.mrf.mxu0  ;;  %v1619_v13 = vpop.f32.mrf.mxu1 }
 0x49b   : > { %3018 = vmatmul.mubr.msk.f32.vlgmr.msra.gmra.mxu0 %vm977_vm3, %v1619_v13 }
 0x49c   : > { %v2968_v14 = vpop.f32.mrf.mxu0  ;;  %v2973_v27 = vpop.f32.mrf.mxu1  ;;  %3026 = vmatpush3.msk.msra.mxu0 %vm1881_vm5, %v1874_v10  ;;  %3027 = vmatprep.mubr.msk.f32.mxu0 %vm3553_vm1, %v3552_v7 }
 0x49d   : > { %3035 = vmatprep.subr.mxu0 %v3552_v7 }
 0x49e   : > { %v1622_v16 = vpop.f32.mrf.mxu1  ;;  %v1668_v11 = vpop.f32.mrf.mxu0 }
 0x49f   : > { %3023 = vmatmul.mubr.msk.f32.vlgmr.msra.gmra.mxu1 %vm977_vm3, %v1668_v11 }
 0x4a0   : > { %v2974_v17 = vpop.f32.mrf.mxu1  ;;  %v2979_v18 = vpop.f32.mrf.mxu0  ;;  %3031 = vmatpush3.msk.msra.mxu1 %vm1881_vm5, %v1875_v29  ;;  %3032 = vmatprep.mubr.msk.f32.mxu1 %vm3553_vm1, %v3552_v7 }
 0x4a1   : > { %3040 = vmatprep.subr.mxu1 %v3552_v7 }
 0x4a2   : > { %v1671_v19 = vpop.f32.mrf.mxu0  ;;  %v1717_v20 = vpop.f32.mrf.mxu1 }
 0x4a3   : > { %3028 = vmatmul.mubr.msk.f32.vlgmr.msra.gmra.mxu0 %vm977_vm3, %v1717_v20 }
 0x4a4   : > { %v2980_v21 = vpop.f32.mrf.mxu0  ;;  %v2985_v22 = vpop.f32.mrf.mxu1  ;;  %3036 = vmatpush3.msk.msra.mxu0 %vm1881_vm5, %v1876_v15  ;;  %3037 = vmatprep.mubr.msk.f32.mxu0 %vm3553_vm1, %v3552_v7 }
 0x4a6   : > { %v1720_v23 = vpop.f32.mrf.mxu1 }
 0x4a8   : > { %v2986_v24 = vpop.f32.mrf.mxu1 }
 0x4ab   : > { %v1815_v25 = vpop.f32.mrf.mxu1 }
 0x4ac   : > { %3038 = vmatmul.mubr.msk.f32.vlgmr.msra.gmra.mxu0 %vm977_vm3, %v1815_v25 }
 0x4ad   : > { %v2997_v26 = vpop.f32.mrf.mxu1 }
 0x4af   : > { %v1766_v30 = vpop.f32.mrf.mxu0  ;;  %v1818_v31 = vpop.f32.mrf.mxu1 }
 0x4b0   : > { %3033 = vmatmul.mubr.msk.f32.vlgmr.msra.gmra.mxu1 %vm977_vm3, %v1766_v30 }
 0x4b1   : > { %v2991_v32 = vpop.f32.mrf.mxu0  ;;  %3041 = vmatpush3.msk.msra.mxu1 %vm1881_vm5, %v1877_v28  ;;  %3042 = vmatprep.mubr.msk.f32.mxu1 %vm3553_vm1, %v3552_v7  ;;  %v2998_v33 = vpop.f32.mrf.mxu1 }
 0x4b3   : > { %v1769_v34 = vpop.f32.mrf.mxu0 }
 0x4b5   : > { %v2992_v35 = vpop.f32.mrf.mxu0 }
 0x4b7   : > { %v1864_v36 = vpop.f32.mrf.mxu0 }
 0x4b8   : > { %3043 = vmatmul.mubr.msk.f32.vlgmr.msra.gmra.mxu1 %vm977_vm3, %v1864_v36 }
 0x4b9   : > { %v3003_v37 = vpop.f32.mrf.mxu0 }
 0x4bb   : > { %v1867_v38 = vpop.f32.mrf.mxu0 }
 0x4bd   : > { %v3004_v39 = vpop.f32.mrf.mxu0 }
 0x507   : > { %v1951_v40 = vpop.f32.mrf.mxu1 }
 0x508   : > { %v2487_v50 = vsel %vm420_vm0, %v1951_v40, 0.0 }
 0x509   : > { %v3009_v41 = vpop.f32.mrf.mxu1 }
 0x557   : > { %v2027_v42 = vpop.f32.mrf.mxu1 }
 0x558   : > { %v2488_v7 = vsel %vm420_vm0, %v2027_v42, 0.0 }
 0x559   : > { %v3014_v43 = vpop.f32.mrf.mxu1  ;;  %v2489_v52 = vadd.f32 %v2488_v7, %v2487_v50 }
 0x55b   : > { %v2103_v44 = vpop.f32.mrf.mxu0 }
 0x55c   : > { %v2490_v51 = vsel %vm420_vm0, %v2103_v44, 0.0 }
 0x55d   : > { %v3019_v45 = vpop.f32.mrf.mxu0  ;;  %v2491_v55 = vadd.f32 %v2490_v51, %v2489_v52 }
 0x55f   : > { %v2179_v46 = vpop.f32.mrf.mxu1 }
 0x560   : > { %v2492_v53 = vsel %vm420_vm0, %v2179_v46, 0.0 }
 0x561   : > { %v3024_v47 = vpop.f32.mrf.mxu1  ;;  %v2493_v58 = vadd.f32 %v2492_v53, %v2491_v55 }
 0x563   : > { %v2255_v48 = vpop.f32.mrf.mxu0 }
 0x564   : > { %v2494_v56 = vsel %vm420_vm0, %v2255_v48, 0.0 }
 0x565   : > { %v3029_v49 = vpop.f32.mrf.mxu0  ;;  %v2495_v61 = vadd.f32 %v2494_v56, %v2493_v58 }
 0x56c   : > { %v2407_v54 = vpop.f32.mrf.mxu0 }
 0x56d   : > { %v2498_v0 = vsel %vm420_vm0, %v2407_v54, 0.0 }
 0x56e   : > { %v3039_v57 = vpop.f32.mrf.mxu0 }
 0x570   : > { %v2331_v59 = vpop.f32.mrf.mxu1 }
 0x571   : > { %v2496_v60 = vsel %vm420_vm0, %v2331_v59, 0.0 }
 0x572   : > { %v3034_v62 = vpop.f32.mrf.mxu1  ;;  %v2497_v63 = vadd.f32 %v2496_v60, %v2495_v61 }
 0x574   : > { %v2499_v2 = vadd.f32 %v2498_v0, %v2497_v63 }
 0x578   : > { %v2483_v1 = vpop.f32.mrf.mxu1 }
 0x579   : > { %v2500_v3 = vsel %vm420_vm0, %v2483_v1, 0.0 }
 0x57a   : > { %v2501_v5 = vadd.f32 %v2500_v3, %v2499_v2  ;;  %v3044_v6 = vpop.f32.mrf.mxu1 }
 0x57c   : > { %v2509_v8 = vadd.f32 %v2773_v4, %v2501_v5 }
 0x57e   : > { %2510 = vst.msk [vmem:[%s408_s20] sm:$0xff] %vm420_vm0, %v2509_v8 }
 0x57f   : > { %3457 = shalt.err (!%p3454_p8)
}
 0x580   : > { %s3458_s29 = scalar_lea.hbm %s2524_s3, 128  ;;  %s3462_s30 = scalar_lea.hbm %s4101_s7, 256 }
 0x581   : > { %p3459_p2 = scmp.ne.s32.totalorder %s2524_s3, %s3458_s29  ;;  %p3463_p11 = scmp.lt.s32.totalorder %s2524_s3, %s4101_s7 }
 0x582   : > { %p3464_p5 = scmp.lt.s32.totalorder %s3462_s30, %s3458_s29 }
 0x583   : > { %p3460_p3 = pnand %p3459_p2, %p3718_p0 }
 0x584   : > { %p3465_p4 = por %p3464_p5, %p3463_p11 }
 0x585   : > { %p3461_p13 = pneg %p3460_p3 }
 0x587   : > { %p3466_p10 = pnand %p3465_p4, %p3461_p13 }
 0x589   : > { %3469 = shalt.err (!%p3466_p10)
}
 0x58a   : > { %3065 = dma.vmem_to_hbm [thread:$0]  (%p3718_p0), %s2527_s17, 128, %s2524_s3, %s2512_s4  }
 0x58b PF: > { %s4137_s16 = sld [smem:[#allocation23_spill]]  ;;  %s2538_s8 = sand.u32 1, %s3520_s24  }
 0x58c   : > { %s2539_s15 = scalar_lea.sflag [#allocation6], %s2538_s8 }
 0x591   : > { %p4138_p12 = scmp.ge.s32.totalorder %s4137_s16, 2 }
 0x593   : > { %p3088_p7 = pnand %p4138_p12, %p3647_p6 }
 0x595   : > { %p3089_p1 = pneg %p3088_p7 }
 0x597   : > { %3515 = dma.done.wait (%p3089_p1), %s2539_s15, 128  }
 0x598   : > { %3517 = vsyncadd (%p3089_p1), %s2539_s15, 4294967168  ;;  %s28_s29 = sadd.s32 1, %s4137_s16   ;;  %s4139_s19 = sld [smem:[#allocation22_spill]] }
 0x599   : > { %p25_p9 = scmp.ge.s32.totalorder %s28_s29, 4   ;;  %s4140_s26 = sld [smem:[#allocation25_spill]] }
 0x59a   : > { %s4141_s14 = sld [smem:[#allocation24_spill]]  ;;  %s4142_s24 = smov %s3524_s25 }
 0x59b   : > { %s4144_s27 = smov %s3536_s28 }
 0x59c   :  { %27 = sbr.rel (!%p25_p9) target bundleno = 16 (0x10), region = 126 }
 0x59e   : > { %s4143_s25 = smov %s4139_s19 }
 0x5a0   : > { %s4145_s28 = smov %s4141_s14 }
 0x5a1   :  { %2544 = vsyncpa [#allocation5], 1 }
 0x5a2   :  { %2546 = vsyncpa [#allocation5 + $0x1], 1 }
 0x5a3   :  { %2547 = vsyncpa [#allocation8], 1 }
 0x5a4   :  { %2549 = vsyncpa [#allocation8 + $0x1], 1 }
 0x5a5   :  { %2550 = vsyncpa [#allocation11], 1 }
 0x5a6   :  { %2551 = vsyncpa [#allocation14], 1 }
 0x5a7   :  { %2552 = vsyncpa [#allocation6], 1 }
 0x5a8   :  { %2554 = vsyncpa [#allocation6 + $0x1], 1 }

</bundles_post_ra>
